<compile_context>
chip_gen: v6e
topology: v6e:2x2x1
jax: 0.10.0
libtpu: 0.0.40
codegen_flags: <defaults>
</compile_context>

<pallas_src>
import math

import jax
import jax.numpy as jnp
from jax.experimental import pallas as pl
from jax.experimental.pallas import tpu as pltpu

# ----------------------- model hyper-parameters (module defaults) ------------
NUM_CLASSES = 2
INPUT_SIZE = 20     # features / conv in-channels
NUM_KERNELS = 32    # conv out-channels == LSTM input size
HIDDEN_SIZE = 32
NUM_LAYERS = 2
NUM_WINDOWS = 10    # sequence length T
BATCH = 4

# ------------------- f32 parameter-slab row layout (lane width = 4H = 128) ---
OFF_W0 = 0                       # rows [0, C)       : fused conv⊗wih0, (C, 4H)
OFF_B0 = 24                      # row  24           : fused layer-0 bias (1, 4H)
OFF_B1 = 25                      # row  25           : layer-1 bias (1, 4H)
OFF_BLIN = 26                    # row  26           : padded classifier bias (1, 128)
OFF_WLIN = 32                    # rows [32, 32+H)   : padded classifier weight (H, 128)
F32_ROWS = 64                    # total (multiple of 8)


# ----------------------------- Pallas kernel ---------------------------------
def cnn_lstm_kernel(x_ref, wlstm_ref, pf32_ref, out_ref):
    B = out_ref.shape[0]                 # padded batch (multiple of 8)
    H = wlstm_ref.shape[0] // 3          # hidden size
    TB, C = x_ref.shape                  # (T*B, C_in), time-major rows
    T = TB // B

    # --- static slab slices ---------------------------------------------------
    w0 = pf32_ref[OFF_W0:OFF_W0 + C, :]            # (C, 4H) fused conv⊗wih0, f32
    b0 = pf32_ref[OFF_B0:OFF_B0 + 1, :]            # (1, 4H)
    b1 = pf32_ref[OFF_B1:OFF_B1 + 1, :]            # (1, 4H)
    blin = pf32_ref[OFF_BLIN:OFF_BLIN + 1, :]      # (1, 128) pad lanes = -1e30
    wlin = pf32_ref[OFF_WLIN:OFF_WLIN + H, :]      # (H, 128) padded classifier

    whh0 = wlstm_ref[0:H, :]                       # (H, 4H)  bf16
    w_l1 = wlstm_ref[H:3 * H, :]                   # (2H, 4H) bf16 = [wih1; whh1]

    # --- hoisted layer-0 input projection (conv + bias already folded in) -----
    x_proj0 = jnp.dot(x_ref[...], w0,
                      preferred_element_type=jnp.float32) + b0     # (T*B, 4H) f32

    # broadcast layer-1 bias ONCE (JAX does not CSE broadcast_in_dim per-iter)
    b1b = jnp.broadcast_to(b1, (B, 4 * H))

    h0 = jnp.zeros((B, H), jnp.float32)
    c0 = jnp.zeros((B, H), jnp.float32)
    h1 = jnp.zeros((B, H), jnp.float32)
    c1 = jnp.zeros((B, H), jnp.float32)

    def gates(g, c):
        # Full-vreg EUP nonlinearities over (B, 4H), then lane-slice the
        # i/f/g/o chunks (PyTorch gate order).  Element-wise math stays f32.
        s = jax.nn.sigmoid(g)                                      # (B, 4H)
        th = jnp.tanh(g)                                           # (B, 4H)
        c_new = s[:, H:2 * H] * c + s[:, 0:H] * th[:, 2 * H:3 * H]
        h_new = s[:, 3 * H:4 * H] * jnp.tanh(c_new)
        return h_new, c_new

    # --- fused 2-layer LSTM recurrence (T small & static -> unrolled) ---------
    for t in range(T):
        # layer 0: only the recurrent matmul is on the per-step critical path
        g0 = x_proj0[t * B:(t + 1) * B, :] + jnp.dot(
            h0.astype(jnp.bfloat16), whh0, preferred_element_type=jnp.float32)
        h0, c0 = gates(g0, c0)

        # layer 1: single merged matmul  [h0_t, h1_{t-1}] @ [wih1; whh1]
        h01 = jnp.concatenate([h0, h1], axis=1).astype(jnp.bfloat16)   # (B, 2H)
        g1 = jnp.dot(h01, w_l1, preferred_element_type=jnp.float32) + b1b
        h1, c1 = gates(g1, c1)
    # (inter-layer and post-LSTM dropout are identity at inference)

    # --- Linear (padded to 128 lanes) + LogSoftmax over all 128 lanes ---------
    # pad-lane bias of -1e30 -> exp underflows to 0, so the LSE over 128 lanes
    # equals the LSE over the NUM_CLASSES real lanes.
    logits = jnp.dot(h1, wlin, preferred_element_type=jnp.float32) + blin
    m = jnp.max(logits, axis=1, keepdims=True)
    lse = jnp.log(jnp.sum(jnp.exp(logits - m), axis=1, keepdims=True)) + m
    out_ref[...] = (logits - lse).astype(out_ref.dtype)            # (B, 128)


# ------------------------------- wrapper --------------------------------------
def pack_params(params):
    """Fold conv into the layer-0 projection and pack everything into 2 slabs."""
    H = HIDDEN_SIZE

    # fused layer-0 input projection: (x @ conv_w + conv_b) @ wih0 + b0
    w0 = params["conv_w"] @ params["wih0"]                       # (C, 4H)
    b0 = params["conv_b"] @ params["wih0"] + params["b0"]        # (1, 4H)

    # padded classifier (128 output lanes, pad bias = -1e30)
    wlin = jnp.zeros((H, 4 * H), jnp.float32).at[:, :NUM_CLASSES].set(params["lin_w"])
    blin = jnp.full((4 * H,), -1e30, jnp.float32).at[:NUM_CLASSES].set(params["lin_b"][0])

    f32_slab = jnp.zeros((F32_ROWS, 4 * H), jnp.float32)
    f32_slab = f32_slab.at[OFF_W0:OFF_W0 + INPUT_SIZE].set(w0)
    f32_slab = f32_slab.at[OFF_B0].set(b0[0])
    f32_slab = f32_slab.at[OFF_B1].set(params["b1"][0])
    f32_slab = f32_slab.at[OFF_BLIN].set(blin)
    f32_slab = f32_slab.at[OFF_WLIN:OFF_WLIN + H].set(wlin)

    # bf16 slab: rows [0:H) = whh0, rows [H:3H) = [wih1; whh1]
    bf16_slab = jnp.concatenate(
        [params["whh0"], params["wih1"], params["whh1"]], axis=0
    ).astype(jnp.bfloat16)                                       # (3H, 4H)

    return f32_slab, bf16_slab


@jax.jit
def one_dim_cnn_lstm_forward(x_bct, f32_slab, bf16_slab):
    """x_bct: (B, C_in, T) float32 -- same layout as the PyTorch module."""
    B, C, T = x_bct.shape
    B_pad = ((B + 7) // 8) * 8           # fill f32 sublanes (8 rows / vreg)
    x_pad = jnp.pad(x_bct, ((0, B_pad - B), (0, 0), (0, 0)))
    # Time-major rows: (T, B_pad, C) -> (T*B_pad, C) so the kernel's per-step
    # slice of the hoisted projection is a static, sublane-aligned row block.
    x_rows = jnp.transpose(x_pad, (2, 0, 1)).reshape(T * B_pad, C)

    vmem = pl.BlockSpec(memory_space=pltpu.MemorySpace.VMEM)
    out = pl.pallas_call(
        cnn_lstm_kernel,
        out_shape=jax.ShapeDtypeStruct((B_pad, 4 * HIDDEN_SIZE), jnp.float32),
        in_specs=[vmem, vmem, vmem],
        out_specs=vmem,
    )(x_rows, bf16_slab, f32_slab)
    return out[:B, :NUM_CLASSES]


# -------------------------- deterministic params -------------------------------
def init_params(key):
    ks = jax.random.split(key, 12)

    def unif(k, shape, fan_in):
        s = 1.0 / math.sqrt(fan_in)
        return jax.random.uniform(k, shape, jnp.float32, -s, s)

    H = HIDDEN_SIZE
    params = {
        # Conv1d(INPUT_SIZE, NUM_KERNELS, 1): torch weight (K, C, 1) -> store (C, K)
        "conv_w": unif(ks[0], (INPUT_SIZE, NUM_KERNELS), INPUT_SIZE),
        "conv_b": unif(ks[1], (1, NUM_KERNELS), INPUT_SIZE),
        # LSTM layer 0: torch weight_ih (4H, K) -> store transposed (K, 4H)
        "wih0": unif(ks[2], (NUM_KERNELS, 4 * H), H),
        "whh0": unif(ks[3], (H, 4 * H), H),
        "b0": unif(ks[4], (1, 4 * H), H) + unif(ks[5], (1, 4 * H), H),  # b_ih + b_hh
        # LSTM layer 1 (input size == H)
        "wih1": unif(ks[6], (H, 4 * H), H),
        "whh1": unif(ks[7], (H, 4 * H), H),
        "b1": unif(ks[8], (1, 4 * H), H) + unif(ks[9], (1, 4 * H), H),
        # Linear(H, NUM_CLASSES): torch weight (num_classes, H) -> store (H, num_classes)
        "lin_w": unif(ks[10], (H, NUM_CLASSES), H),
        "lin_b": unif(ks[11], (1, NUM_CLASSES), H),
    }
    return params


if __name__ == "__main__":
    key = jax.random.PRNGKey(0)
    k_x, k_p = jax.random.split(key)

    # module contract: x of shape (batch_size, features, num_windows)
    x = jax.random.normal(k_x, (BATCH, INPUT_SIZE, NUM_WINDOWS), jnp.float32)
    params = init_params(k_p)
    f32_slab, bf16_slab = pack_params(params)

    out = one_dim_cnn_lstm_forward(x, f32_slab, bf16_slab)
    out = jax.block_until_ready(out)

    assert out.shape == (BATCH, NUM_CLASSES)
    # sanity: rows of a log-softmax exponentiate to probabilities summing to 1
    assert jnp.allclose(jnp.sum(jnp.exp(out), axis=1), 1.0, atol=1e-3)
    assert bool(jnp.all(jnp.isfinite(out)))
    print("KERNEL_OK")
</pallas_src>

<mosaic_0001>
module attributes {stable_mosaic.version = 11 : i64} {
  func.func @cnn_lstm_kernel(%arg0: memref<80x20xf32, #tpu.memory_space<vmem>>, %arg1: memref<96x128xbf16, #tpu.memory_space<vmem>>, %arg2: memref<64x128xf32, #tpu.memory_space<vmem>>, %arg3: memref<8x128xf32, #tpu.memory_space<vmem>>) attributes {dimension_semantics = [], scalar_prefetch = 0 : i64, scratch_operands = 0 : i64, tpu.core_type = #tpu.core_type<tc>} {
    %c0 = arith.constant 0 : index
    %c0_0 = arith.constant 0 : index
    %0 = vector.load %arg2[%c0, %c0_0] : memref<64x128xf32, #tpu.memory_space<vmem>>, vector<20x128xf32>
    %c24 = arith.constant 24 : index
    %c0_1 = arith.constant 0 : index
    %1 = vector.load %arg2[%c24, %c0_1] : memref<64x128xf32, #tpu.memory_space<vmem>>, vector<1x128xf32>
    %c25 = arith.constant 25 : index
    %c0_2 = arith.constant 0 : index
    %2 = vector.load %arg2[%c25, %c0_2] : memref<64x128xf32, #tpu.memory_space<vmem>>, vector<1x128xf32>
    %c26 = arith.constant 26 : index
    %c0_3 = arith.constant 0 : index
    %3 = vector.load %arg2[%c26, %c0_3] : memref<64x128xf32, #tpu.memory_space<vmem>>, vector<1x128xf32>
    %c32 = arith.constant 32 : index
    %c0_4 = arith.constant 0 : index
    %4 = vector.load %arg2[%c32, %c0_4] : memref<64x128xf32, #tpu.memory_space<vmem>>, vector<32x128xf32>
    %c0_5 = arith.constant 0 : index
    %c0_6 = arith.constant 0 : index
    %5 = vector.load %arg1[%c0_5, %c0_6] : memref<96x128xbf16, #tpu.memory_space<vmem>>, vector<32x128xbf16>
    %c32_7 = arith.constant 32 : index
    %c0_8 = arith.constant 0 : index
    %6 = vector.load %arg1[%c32_7, %c0_8] : memref<96x128xbf16, #tpu.memory_space<vmem>>, vector<64x128xbf16>
    %c0_9 = arith.constant 0 : index
    %c0_10 = arith.constant 0 : index
    %7 = vector.load %arg0[%c0_9, %c0_10] : memref<80x20xf32, #tpu.memory_space<vmem>>, vector<80x20xf32>
    %cst = arith.constant dense<0.000000e+00> : vector<80x128xf32>
    %8 = tpu.matmul %7, %0, %cst {dimension_numbers = #tpu.dot_dimension_numbers<[1], [0], [0], [1], [0, 0, 1, 1], [], []>} : vector<80x20xf32>, vector<20x128xf32>, vector<80x128xf32> -> vector<80x128xf32>
    %9 = vector.broadcast %1 : vector<1x128xf32> to vector<80x128xf32>
    %10 = arith.addf %8, %9 : vector<80x128xf32>
    %11 = vector.shape_cast %2 : vector<1x128xf32> to vector<1x128xf32>
    %12 = vector.broadcast %11 : vector<1x128xf32> to vector<8x128xf32>
    %cst_11 = arith.constant 0.000000e+00 : f32
    %13 = vector.broadcast %cst_11 : f32 to vector<8x32xf32>
    %cst_12 = arith.constant 0.000000e+00 : f32
    %14 = vector.broadcast %cst_12 : f32 to vector<8x32xf32>
    %cst_13 = arith.constant 0.000000e+00 : f32
    %15 = vector.broadcast %cst_13 : f32 to vector<8x32xf32>
    %cst_14 = arith.constant 0.000000e+00 : f32
    %16 = vector.broadcast %cst_14 : f32 to vector<8x32xf32>
    %17 = vector.extract_strided_slice %10 {offsets = [0, 0], sizes = [8, 128], strides = [1, 1]} : vector<80x128xf32> to vector<8x128xf32>
    %18 = arith.truncf %13 : vector<8x32xf32> to vector<8x32xbf16>
    %cst_15 = arith.constant dense<0.000000e+00> : vector<8x128xf32>
    %19 = tpu.matmul %18, %5, %cst_15 {dimension_numbers = #tpu.dot_dimension_numbers<[1], [0], [0], [1], [0, 0, 1, 1], [], []>} : vector<8x32xbf16>, vector<32x128xbf16>, vector<8x128xf32> -> vector<8x128xf32>
    %20 = arith.addf %17, %19 : vector<8x128xf32>
    %21 = arith.negf %20 : vector<8x128xf32>
    %22 = math.exp %21 : vector<8x128xf32>
    %cst_16 = arith.constant 1.000000e+00 : f32
    %23 = vector.broadcast %cst_16 : f32 to vector<8x128xf32>
    %24 = arith.addf %23, %22 : vector<8x128xf32>
    %25 = arith.divf %23, %24 : vector<8x128xf32>
    %26 = math.tanh %20 : vector<8x128xf32>
    %27 = vector.extract_strided_slice %25 {offsets = [0, 32], sizes = [8, 32], strides = [1, 1]} : vector<8x128xf32> to vector<8x32xf32>
    %28 = arith.mulf %27, %14 : vector<8x32xf32>
    %29 = vector.extract_strided_slice %25 {offsets = [0, 0], sizes = [8, 32], strides = [1, 1]} : vector<8x128xf32> to vector<8x32xf32>
    %30 = vector.extract_strided_slice %26 {offsets = [0, 64], sizes = [8, 32], strides = [1, 1]} : vector<8x128xf32> to vector<8x32xf32>
    %31 = arith.mulf %29, %30 : vector<8x32xf32>
    %32 = arith.addf %28, %31 : vector<8x32xf32>
    %33 = vector.extract_strided_slice %25 {offsets = [0, 96], sizes = [8, 32], strides = [1, 1]} : vector<8x128xf32> to vector<8x32xf32>
    %34 = math.tanh %32 : vector<8x32xf32>
    %35 = arith.mulf %33, %34 : vector<8x32xf32>
    %36 = tpu.concatenate %35, %15 in 1 : vector<8x32xf32>, vector<8x32xf32> -> vector<8x64xf32>
    %37 = arith.truncf %36 : vector<8x64xf32> to vector<8x64xbf16>
    %cst_17 = arith.constant dense<0.000000e+00> : vector<8x128xf32>
    %38 = tpu.matmul %37, %6, %cst_17 {dimension_numbers = #tpu.dot_dimension_numbers<[1], [0], [0], [1], [0, 0, 1, 1], [], []>} : vector<8x64xbf16>, vector<64x128xbf16>, vector<8x128xf32> -> vector<8x128xf32>
    %39 = arith.addf %38, %12 : vector<8x128xf32>
    %40 = arith.negf %39 : vector<8x128xf32>
    %41 = math.exp %40 : vector<8x128xf32>
    %cst_18 = arith.constant 1.000000e+00 : f32
    %42 = vector.broadcast %cst_18 : f32 to vector<8x128xf32>
    %43 = arith.addf %42, %41 : vector<8x128xf32>
    %44 = arith.divf %42, %43 : vector<8x128xf32>
    %45 = math.tanh %39 : vector<8x128xf32>
    %46 = vector.extract_strided_slice %44 {offsets = [0, 32], sizes = [8, 32], strides = [1, 1]} : vector<8x128xf32> to vector<8x32xf32>
    %47 = arith.mulf %46, %16 : vector<8x32xf32>
    %48 = vector.extract_strided_slice %44 {offsets = [0, 0], sizes = [8, 32], strides = [1, 1]} : vector<8x128xf32> to vector<8x32xf32>
    %49 = vector.extract_strided_slice %45 {offsets = [0, 64], sizes = [8, 32], strides = [1, 1]} : vector<8x128xf32> to vector<8x32xf32>
    %50 = arith.mulf %48, %49 : vector<8x32xf32>
    %51 = arith.addf %47, %50 : vector<8x32xf32>
    %52 = vector.extract_strided_slice %44 {offsets = [0, 96], sizes = [8, 32], strides = [1, 1]} : vector<8x128xf32> to vector<8x32xf32>
    %53 = math.tanh %51 : vector<8x32xf32>
    %54 = arith.mulf %52, %53 : vector<8x32xf32>
    %55 = vector.extract_strided_slice %10 {offsets = [8, 0], sizes = [8, 128], strides = [1, 1]} : vector<80x128xf32> to vector<8x128xf32>
    %56 = arith.truncf %35 : vector<8x32xf32> to vector<8x32xbf16>
    %cst_19 = arith.constant dense<0.000000e+00> : vector<8x128xf32>
    %57 = tpu.matmul %56, %5, %cst_19 {dimension_numbers = #tpu.dot_dimension_numbers<[1], [0], [0], [1], [0, 0, 1, 1], [], []>} : vector<8x32xbf16>, vector<32x128xbf16>, vector<8x128xf32> -> vector<8x128xf32>
    %58 = arith.addf %55, %57 : vector<8x128xf32>
    %59 = arith.negf %58 : vector<8x128xf32>
    %60 = math.exp %59 : vector<8x128xf32>
    %cst_20 = arith.constant 1.000000e+00 : f32
    %61 = vector.broadcast %cst_20 : f32 to vector<8x128xf32>
    %62 = arith.addf %61, %60 : vector<8x128xf32>
    %63 = arith.divf %61, %62 : vector<8x128xf32>
    %64 = math.tanh %58 : vector<8x128xf32>
    %65 = vector.extract_strided_slice %63 {offsets = [0, 32], sizes = [8, 32], strides = [1, 1]} : vector<8x128xf32> to vector<8x32xf32>
    %66 = arith.mulf %65, %32 : vector<8x32xf32>
    %67 = vector.extract_strided_slice %63 {offsets = [0, 0], sizes = [8, 32], strides = [1, 1]} : vector<8x128xf32> to vector<8x32xf32>
    %68 = vector.extract_strided_slice %64 {offsets = [0, 64], sizes = [8, 32], strides = [1, 1]} : vector<8x128xf32> to vector<8x32xf32>
    %69 = arith.mulf %67, %68 : vector<8x32xf32>
    %70 = arith.addf %66, %69 : vector<8x32xf32>
    %71 = vector.extract_strided_slice %63 {offsets = [0, 96], sizes = [8, 32], strides = [1, 1]} : vector<8x128xf32> to vector<8x32xf32>
    %72 = math.tanh %70 : vector<8x32xf32>
    %73 = arith.mulf %71, %72 : vector<8x32xf32>
    %74 = tpu.concatenate %73, %54 in 1 : vector<8x32xf32>, vector<8x32xf32> -> vector<8x64xf32>
    %75 = arith.truncf %74 : vector<8x64xf32> to vector<8x64xbf16>
    %cst_21 = arith.constant dense<0.000000e+00> : vector<8x128xf32>
    %76 = tpu.matmul %75, %6, %cst_21 {dimension_numbers = #tpu.dot_dimension_numbers<[1], [0], [0], [1], [0, 0, 1, 1], [], []>} : vector<8x64xbf16>, vector<64x128xbf16>, vector<8x128xf32> -> vector<8x128xf32>
    %77 = arith.addf %76, %12 : vector<8x128xf32>
    %78 = arith.negf %77 : vector<8x128xf32>
    %79 = math.exp %78 : vector<8x128xf32>
    %cst_22 = arith.constant 1.000000e+00 : f32
    %80 = vector.broadcast %cst_22 : f32 to vector<8x128xf32>
    %81 = arith.addf %80, %79 : vector<8x128xf32>
    %82 = arith.divf %80, %81 : vector<8x128xf32>
    %83 = math.tanh %77 : vector<8x128xf32>
    %84 = vector.extract_strided_slice %82 {offsets = [0, 32], sizes = [8, 32], strides = [1, 1]} : vector<8x128xf32> to vector<8x32xf32>
    %85 = arith.mulf %84, %51 : vector<8x32xf32>
    %86 = vector.extract_strided_slice %82 {offsets = [0, 0], sizes = [8, 32], strides = [1, 1]} : vector<8x128xf32> to vector<8x32xf32>
    %87 = vector.extract_strided_slice %83 {offsets = [0, 64], sizes = [8, 32], strides = [1, 1]} : vector<8x128xf32> to vector<8x32xf32>
    %88 = arith.mulf %86, %87 : vector<8x32xf32>
    %89 = arith.addf %85, %88 : vector<8x32xf32>
    %90 = vector.extract_strided_slice %82 {offsets = [0, 96], sizes = [8, 32], strides = [1, 1]} : vector<8x128xf32> to vector<8x32xf32>
    %91 = math.tanh %89 : vector<8x32xf32>
    %92 = arith.mulf %90, %91 : vector<8x32xf32>
    %93 = vector.extract_strided_slice %10 {offsets = [16, 0], sizes = [8, 128], strides = [1, 1]} : vector<80x128xf32> to vector<8x128xf32>
    %94 = arith.truncf %73 : vector<8x32xf32> to vector<8x32xbf16>
    %cst_23 = arith.constant dense<0.000000e+00> : vector<8x128xf32>
    %95 = tpu.matmul %94, %5, %cst_23 {dimension_numbers = #tpu.dot_dimension_numbers<[1], [0], [0], [1], [0, 0, 1, 1], [], []>} : vector<8x32xbf16>, vector<32x128xbf16>, vector<8x128xf32> -> vector<8x128xf32>
    %96 = arith.addf %93, %95 : vector<8x128xf32>
    %97 = arith.negf %96 : vector<8x128xf32>
    %98 = math.exp %97 : vector<8x128xf32>
    %cst_24 = arith.constant 1.000000e+00 : f32
    %99 = vector.broadcast %cst_24 : f32 to vector<8x128xf32>
    %100 = arith.addf %99, %98 : vector<8x128xf32>
    %101 = arith.divf %99, %100 : vector<8x128xf32>
    %102 = math.tanh %96 : vector<8x128xf32>
    %103 = vector.extract_strided_slice %101 {offsets = [0, 32], sizes = [8, 32], strides = [1, 1]} : vector<8x128xf32> to vector<8x32xf32>
    %104 = arith.mulf %103, %70 : vector<8x32xf32>
    %105 = vector.extract_strided_slice %101 {offsets = [0, 0], sizes = [8, 32], strides = [1, 1]} : vector<8x128xf32> to vector<8x32xf32>
    %106 = vector.extract_strided_slice %102 {offsets = [0, 64], sizes = [8, 32], strides = [1, 1]} : vector<8x128xf32> to vector<8x32xf32>
    %107 = arith.mulf %105, %106 : vector<8x32xf32>
    %108 = arith.addf %104, %107 : vector<8x32xf32>
    %109 = vector.extract_strided_slice %101 {offsets = [0, 96], sizes = [8, 32], strides = [1, 1]} : vector<8x128xf32> to vector<8x32xf32>
    %110 = math.tanh %108 : vector<8x32xf32>
    %111 = arith.mulf %109, %110 : vector<8x32xf32>
    %112 = tpu.concatenate %111, %92 in 1 : vector<8x32xf32>, vector<8x32xf32> -> vector<8x64xf32>
    %113 = arith.truncf %112 : vector<8x64xf32> to vector<8x64xbf16>
    %cst_25 = arith.constant dense<0.000000e+00> : vector<8x128xf32>
    %114 = tpu.matmul %113, %6, %cst_25 {dimension_numbers = #tpu.dot_dimension_numbers<[1], [0], [0], [1], [0, 0, 1, 1], [], []>} : vector<8x64xbf16>, vector<64x128xbf16>, vector<8x128xf32> -> vector<8x128xf32>
    %115 = arith.addf %114, %12 : vector<8x128xf32>
    %116 = arith.negf %115 : vector<8x128xf32>
    %117 = math.exp %116 : vector<8x128xf32>
    %cst_26 = arith.constant 1.000000e+00 : f32
    %118 = vector.broadcast %cst_26 : f32 to vector<8x128xf32>
    %119 = arith.addf %118, %117 : vector<8x128xf32>
    %120 = arith.divf %118, %119 : vector<8x128xf32>
    %121 = math.tanh %115 : vector<8x128xf32>
    %122 = vector.extract_strided_slice %120 {offsets = [0, 32], sizes = [8, 32], strides = [1, 1]} : vector<8x128xf32> to vector<8x32xf32>
    %123 = arith.mulf %122, %89 : vector<8x32xf32>
    %124 = vector.extract_strided_slice %120 {offsets = [0, 0], sizes = [8, 32], strides = [1, 1]} : vector<8x128xf32> to vector<8x32xf32>
    %125 = vector.extract_strided_slice %121 {offsets = [0, 64], sizes = [8, 32], strides = [1, 1]} : vector<8x128xf32> to vector<8x32xf32>
    %126 = arith.mulf %124, %125 : vector<8x32xf32>
    %127 = arith.addf %123, %126 : vector<8x32xf32>
    %128 = vector.extract_strided_slice %120 {offsets = [0, 96], sizes = [8, 32], strides = [1, 1]} : vector<8x128xf32> to vector<8x32xf32>
    %129 = math.tanh %127 : vector<8x32xf32>
    %130 = arith.mulf %128, %129 : vector<8x32xf32>
    %131 = vector.extract_strided_slice %10 {offsets = [24, 0], sizes = [8, 128], strides = [1, 1]} : vector<80x128xf32> to vector<8x128xf32>
    %132 = arith.truncf %111 : vector<8x32xf32> to vector<8x32xbf16>
    %cst_27 = arith.constant dense<0.000000e+00> : vector<8x128xf32>
    %133 = tpu.matmul %132, %5, %cst_27 {dimension_numbers = #tpu.dot_dimension_numbers<[1], [0], [0], [1], [0, 0, 1, 1], [], []>} : vector<8x32xbf16>, vector<32x128xbf16>, vector<8x128xf32> -> vector<8x128xf32>
    %134 = arith.addf %131, %133 : vector<8x128xf32>
    %135 = arith.negf %134 : vector<8x128xf32>
    %136 = math.exp %135 : vector<8x128xf32>
    %cst_28 = arith.constant 1.000000e+00 : f32
    %137 = vector.broadcast %cst_28 : f32 to vector<8x128xf32>
    %138 = arith.addf %137, %136 : vector<8x128xf32>
    %139 = arith.divf %137, %138 : vector<8x128xf32>
    %140 = math.tanh %134 : vector<8x128xf32>
    %141 = vector.extract_strided_slice %139 {offsets = [0, 32], sizes = [8, 32], strides = [1, 1]} : vector<8x128xf32> to vector<8x32xf32>
    %142 = arith.mulf %141, %108 : vector<8x32xf32>
    %143 = vector.extract_strided_slice %139 {offsets = [0, 0], sizes = [8, 32], strides = [1, 1]} : vector<8x128xf32> to vector<8x32xf32>
    %144 = vector.extract_strided_slice %140 {offsets = [0, 64], sizes = [8, 32], strides = [1, 1]} : vector<8x128xf32> to vector<8x32xf32>
    %145 = arith.mulf %143, %144 : vector<8x32xf32>
    %146 = arith.addf %142, %145 : vector<8x32xf32>
    %147 = vector.extract_strided_slice %139 {offsets = [0, 96], sizes = [8, 32], strides = [1, 1]} : vector<8x128xf32> to vector<8x32xf32>
    %148 = math.tanh %146 : vector<8x32xf32>
    %149 = arith.mulf %147, %148 : vector<8x32xf32>
    %150 = tpu.concatenate %149, %130 in 1 : vector<8x32xf32>, vector<8x32xf32> -> vector<8x64xf32>
    %151 = arith.truncf %150 : vector<8x64xf32> to vector<8x64xbf16>
    %cst_29 = arith.constant dense<0.000000e+00> : vector<8x128xf32>
    %152 = tpu.matmul %151, %6, %cst_29 {dimension_numbers = #tpu.dot_dimension_numbers<[1], [0], [0], [1], [0, 0, 1, 1], [], []>} : vector<8x64xbf16>, vector<64x128xbf16>, vector<8x128xf32> -> vector<8x128xf32>
    %153 = arith.addf %152, %12 : vector<8x128xf32>
    %154 = arith.negf %153 : vector<8x128xf32>
    %155 = math.exp %154 : vector<8x128xf32>
    %cst_30 = arith.constant 1.000000e+00 : f32
    %156 = vector.broadcast %cst_30 : f32 to vector<8x128xf32>
    %157 = arith.addf %156, %155 : vector<8x128xf32>
    %158 = arith.divf %156, %157 : vector<8x128xf32>
    %159 = math.tanh %153 : vector<8x128xf32>
    %160 = vector.extract_strided_slice %158 {offsets = [0, 32], sizes = [8, 32], strides = [1, 1]} : vector<8x128xf32> to vector<8x32xf32>
    %161 = arith.mulf %160, %127 : vector<8x32xf32>
    %162 = vector.extract_strided_slice %158 {offsets = [0, 0], sizes = [8, 32], strides = [1, 1]} : vector<8x128xf32> to vector<8x32xf32>
    %163 = vector.extract_strided_slice %159 {offsets = [0, 64], sizes = [8, 32], strides = [1, 1]} : vector<8x128xf32> to vector<8x32xf32>
    %164 = arith.mulf %162, %163 : vector<8x32xf32>
    %165 = arith.addf %161, %164 : vector<8x32xf32>
    %166 = vector.extract_strided_slice %158 {offsets = [0, 96], sizes = [8, 32], strides = [1, 1]} : vector<8x128xf32> to vector<8x32xf32>
    %167 = math.tanh %165 : vector<8x32xf32>
    %168 = arith.mulf %166, %167 : vector<8x32xf32>
    %169 = vector.extract_strided_slice %10 {offsets = [32, 0], sizes = [8, 128], strides = [1, 1]} : vector<80x128xf32> to vector<8x128xf32>
    %170 = arith.truncf %149 : vector<8x32xf32> to vector<8x32xbf16>
    %cst_31 = arith.constant dense<0.000000e+00> : vector<8x128xf32>
    %171 = tpu.matmul %170, %5, %cst_31 {dimension_numbers = #tpu.dot_dimension_numbers<[1], [0], [0], [1], [0, 0, 1, 1], [], []>} : vector<8x32xbf16>, vector<32x128xbf16>, vector<8x128xf32> -> vector<8x128xf32>
    %172 = arith.addf %169, %171 : vector<8x128xf32>
    %173 = arith.negf %172 : vector<8x128xf32>
    %174 = math.exp %173 : vector<8x128xf32>
    %cst_32 = arith.constant 1.000000e+00 : f32
    %175 = vector.broadcast %cst_32 : f32 to vector<8x128xf32>
    %176 = arith.addf %175, %174 : vector<8x128xf32>
    %177 = arith.divf %175, %176 : vector<8x128xf32>
    %178 = math.tanh %172 : vector<8x128xf32>
    %179 = vector.extract_strided_slice %177 {offsets = [0, 32], sizes = [8, 32], strides = [1, 1]} : vector<8x128xf32> to vector<8x32xf32>
    %180 = arith.mulf %179, %146 : vector<8x32xf32>
    %181 = vector.extract_strided_slice %177 {offsets = [0, 0], sizes = [8, 32], strides = [1, 1]} : vector<8x128xf32> to vector<8x32xf32>
    %182 = vector.extract_strided_slice %178 {offsets = [0, 64], sizes = [8, 32], strides = [1, 1]} : vector<8x128xf32> to vector<8x32xf32>
    %183 = arith.mulf %181, %182 : vector<8x32xf32>
    %184 = arith.addf %180, %183 : vector<8x32xf32>
    %185 = vector.extract_strided_slice %177 {offsets = [0, 96], sizes = [8, 32], strides = [1, 1]} : vector<8x128xf32> to vector<8x32xf32>
    %186 = math.tanh %184 : vector<8x32xf32>
    %187 = arith.mulf %185, %186 : vector<8x32xf32>
    %188 = tpu.concatenate %187, %168 in 1 : vector<8x32xf32>, vector<8x32xf32> -> vector<8x64xf32>
    %189 = arith.truncf %188 : vector<8x64xf32> to vector<8x64xbf16>
    %cst_33 = arith.constant dense<0.000000e+00> : vector<8x128xf32>
    %190 = tpu.matmul %189, %6, %cst_33 {dimension_numbers = #tpu.dot_dimension_numbers<[1], [0], [0], [1], [0, 0, 1, 1], [], []>} : vector<8x64xbf16>, vector<64x128xbf16>, vector<8x128xf32> -> vector<8x128xf32>
    %191 = arith.addf %190, %12 : vector<8x128xf32>
    %192 = arith.negf %191 : vector<8x128xf32>
    %193 = math.exp %192 : vector<8x128xf32>
    %cst_34 = arith.constant 1.000000e+00 : f32
    %194 = vector.broadcast %cst_34 : f32 to vector<8x128xf32>
    %195 = arith.addf %194, %193 : vector<8x128xf32>
    %196 = arith.divf %194, %195 : vector<8x128xf32>
    %197 = math.tanh %191 : vector<8x128xf32>
    %198 = vector.extract_strided_slice %196 {offsets = [0, 32], sizes = [8, 32], strides = [1, 1]} : vector<8x128xf32> to vector<8x32xf32>
    %199 = arith.mulf %198, %165 : vector<8x32xf32>
    %200 = vector.extract_strided_slice %196 {offsets = [0, 0], sizes = [8, 32], strides = [1, 1]} : vector<8x128xf32> to vector<8x32xf32>
    %201 = vector.extract_strided_slice %197 {offsets = [0, 64], sizes = [8, 32], strides = [1, 1]} : vector<8x128xf32> to vector<8x32xf32>
    %202 = arith.mulf %200, %201 : vector<8x32xf32>
    %203 = arith.addf %199, %202 : vector<8x32xf32>
    %204 = vector.extract_strided_slice %196 {offsets = [0, 96], sizes = [8, 32], strides = [1, 1]} : vector<8x128xf32> to vector<8x32xf32>
    %205 = math.tanh %203 : vector<8x32xf32>
    %206 = arith.mulf %204, %205 : vector<8x32xf32>
    %207 = vector.extract_strided_slice %10 {offsets = [40, 0], sizes = [8, 128], strides = [1, 1]} : vector<80x128xf32> to vector<8x128xf32>
    %208 = arith.truncf %187 : vector<8x32xf32> to vector<8x32xbf16>
    %cst_35 = arith.constant dense<0.000000e+00> : vector<8x128xf32>
    %209 = tpu.matmul %208, %5, %cst_35 {dimension_numbers = #tpu.dot_dimension_numbers<[1], [0], [0], [1], [0, 0, 1, 1], [], []>} : vector<8x32xbf16>, vector<32x128xbf16>, vector<8x128xf32> -> vector<8x128xf32>
    %210 = arith.addf %207, %209 : vector<8x128xf32>
    %211 = arith.negf %210 : vector<8x128xf32>
    %212 = math.exp %211 : vector<8x128xf32>
    %cst_36 = arith.constant 1.000000e+00 : f32
    %213 = vector.broadcast %cst_36 : f32 to vector<8x128xf32>
    %214 = arith.addf %213, %212 : vector<8x128xf32>
    %215 = arith.divf %213, %214 : vector<8x128xf32>
    %216 = math.tanh %210 : vector<8x128xf32>
    %217 = vector.extract_strided_slice %215 {offsets = [0, 32], sizes = [8, 32], strides = [1, 1]} : vector<8x128xf32> to vector<8x32xf32>
    %218 = arith.mulf %217, %184 : vector<8x32xf32>
    %219 = vector.extract_strided_slice %215 {offsets = [0, 0], sizes = [8, 32], strides = [1, 1]} : vector<8x128xf32> to vector<8x32xf32>
    %220 = vector.extract_strided_slice %216 {offsets = [0, 64], sizes = [8, 32], strides = [1, 1]} : vector<8x128xf32> to vector<8x32xf32>
    %221 = arith.mulf %219, %220 : vector<8x32xf32>
    %222 = arith.addf %218, %221 : vector<8x32xf32>
    %223 = vector.extract_strided_slice %215 {offsets = [0, 96], sizes = [8, 32], strides = [1, 1]} : vector<8x128xf32> to vector<8x32xf32>
    %224 = math.tanh %222 : vector<8x32xf32>
    %225 = arith.mulf %223, %224 : vector<8x32xf32>
    %226 = tpu.concatenate %225, %206 in 1 : vector<8x32xf32>, vector<8x32xf32> -> vector<8x64xf32>
    %227 = arith.truncf %226 : vector<8x64xf32> to vector<8x64xbf16>
    %cst_37 = arith.constant dense<0.000000e+00> : vector<8x128xf32>
    %228 = tpu.matmul %227, %6, %cst_37 {dimension_numbers = #tpu.dot_dimension_numbers<[1], [0], [0], [1], [0, 0, 1, 1], [], []>} : vector<8x64xbf16>, vector<64x128xbf16>, vector<8x128xf32> -> vector<8x128xf32>
    %229 = arith.addf %228, %12 : vector<8x128xf32>
    %230 = arith.negf %229 : vector<8x128xf32>
    %231 = math.exp %230 : vector<8x128xf32>
    %cst_38 = arith.constant 1.000000e+00 : f32
    %232 = vector.broadcast %cst_38 : f32 to vector<8x128xf32>
    %233 = arith.addf %232, %231 : vector<8x128xf32>
    %234 = arith.divf %232, %233 : vector<8x128xf32>
    %235 = math.tanh %229 : vector<8x128xf32>
    %236 = vector.extract_strided_slice %234 {offsets = [0, 32], sizes = [8, 32], strides = [1, 1]} : vector<8x128xf32> to vector<8x32xf32>
    %237 = arith.mulf %236, %203 : vector<8x32xf32>
    %238 = vector.extract_strided_slice %234 {offsets = [0, 0], sizes = [8, 32], strides = [1, 1]} : vector<8x128xf32> to vector<8x32xf32>
    %239 = vector.extract_strided_slice %235 {offsets = [0, 64], sizes = [8, 32], strides = [1, 1]} : vector<8x128xf32> to vector<8x32xf32>
    %240 = arith.mulf %238, %239 : vector<8x32xf32>
    %241 = arith.addf %237, %240 : vector<8x32xf32>
    %242 = vector.extract_strided_slice %234 {offsets = [0, 96], sizes = [8, 32], strides = [1, 1]} : vector<8x128xf32> to vector<8x32xf32>
    %243 = math.tanh %241 : vector<8x32xf32>
    %244 = arith.mulf %242, %243 : vector<8x32xf32>
    %245 = vector.extract_strided_slice %10 {offsets = [48, 0], sizes = [8, 128], strides = [1, 1]} : vector<80x128xf32> to vector<8x128xf32>
    %246 = arith.truncf %225 : vector<8x32xf32> to vector<8x32xbf16>
    %cst_39 = arith.constant dense<0.000000e+00> : vector<8x128xf32>
    %247 = tpu.matmul %246, %5, %cst_39 {dimension_numbers = #tpu.dot_dimension_numbers<[1], [0], [0], [1], [0, 0, 1, 1], [], []>} : vector<8x32xbf16>, vector<32x128xbf16>, vector<8x128xf32> -> vector<8x128xf32>
    %248 = arith.addf %245, %247 : vector<8x128xf32>
    %249 = arith.negf %248 : vector<8x128xf32>
    %250 = math.exp %249 : vector<8x128xf32>
    %cst_40 = arith.constant 1.000000e+00 : f32
    %251 = vector.broadcast %cst_40 : f32 to vector<8x128xf32>
    %252 = arith.addf %251, %250 : vector<8x128xf32>
    %253 = arith.divf %251, %252 : vector<8x128xf32>
    %254 = math.tanh %248 : vector<8x128xf32>
    %255 = vector.extract_strided_slice %253 {offsets = [0, 32], sizes = [8, 32], strides = [1, 1]} : vector<8x128xf32> to vector<8x32xf32>
    %256 = arith.mulf %255, %222 : vector<8x32xf32>
    %257 = vector.extract_strided_slice %253 {offsets = [0, 0], sizes = [8, 32], strides = [1, 1]} : vector<8x128xf32> to vector<8x32xf32>
    %258 = vector.extract_strided_slice %254 {offsets = [0, 64], sizes = [8, 32], strides = [1, 1]} : vector<8x128xf32> to vector<8x32xf32>
    %259 = arith.mulf %257, %258 : vector<8x32xf32>
    %260 = arith.addf %256, %259 : vector<8x32xf32>
    %261 = vector.extract_strided_slice %253 {offsets = [0, 96], sizes = [8, 32], strides = [1, 1]} : vector<8x128xf32> to vector<8x32xf32>
    %262 = math.tanh %260 : vector<8x32xf32>
    %263 = arith.mulf %261, %262 : vector<8x32xf32>
    %264 = tpu.concatenate %263, %244 in 1 : vector<8x32xf32>, vector<8x32xf32> -> vector<8x64xf32>
    %265 = arith.truncf %264 : vector<8x64xf32> to vector<8x64xbf16>
    %cst_41 = arith.constant dense<0.000000e+00> : vector<8x128xf32>
    %266 = tpu.matmul %265, %6, %cst_41 {dimension_numbers = #tpu.dot_dimension_numbers<[1], [0], [0], [1], [0, 0, 1, 1], [], []>} : vector<8x64xbf16>, vector<64x128xbf16>, vector<8x128xf32> -> vector<8x128xf32>
    %267 = arith.addf %266, %12 : vector<8x128xf32>
    %268 = arith.negf %267 : vector<8x128xf32>
    %269 = math.exp %268 : vector<8x128xf32>
    %cst_42 = arith.constant 1.000000e+00 : f32
    %270 = vector.broadcast %cst_42 : f32 to vector<8x128xf32>
    %271 = arith.addf %270, %269 : vector<8x128xf32>
    %272 = arith.divf %270, %271 : vector<8x128xf32>
    %273 = math.tanh %267 : vector<8x128xf32>
    %274 = vector.extract_strided_slice %272 {offsets = [0, 32], sizes = [8, 32], strides = [1, 1]} : vector<8x128xf32> to vector<8x32xf32>
    %275 = arith.mulf %274, %241 : vector<8x32xf32>
    %276 = vector.extract_strided_slice %272 {offsets = [0, 0], sizes = [8, 32], strides = [1, 1]} : vector<8x128xf32> to vector<8x32xf32>
    %277 = vector.extract_strided_slice %273 {offsets = [0, 64], sizes = [8, 32], strides = [1, 1]} : vector<8x128xf32> to vector<8x32xf32>
    %278 = arith.mulf %276, %277 : vector<8x32xf32>
    %279 = arith.addf %275, %278 : vector<8x32xf32>
    %280 = vector.extract_strided_slice %272 {offsets = [0, 96], sizes = [8, 32], strides = [1, 1]} : vector<8x128xf32> to vector<8x32xf32>
    %281 = math.tanh %279 : vector<8x32xf32>
    %282 = arith.mulf %280, %281 : vector<8x32xf32>
    %283 = vector.extract_strided_slice %10 {offsets = [56, 0], sizes = [8, 128], strides = [1, 1]} : vector<80x128xf32> to vector<8x128xf32>
    %284 = arith.truncf %263 : vector<8x32xf32> to vector<8x32xbf16>
    %cst_43 = arith.constant dense<0.000000e+00> : vector<8x128xf32>
    %285 = tpu.matmul %284, %5, %cst_43 {dimension_numbers = #tpu.dot_dimension_numbers<[1], [0], [0], [1], [0, 0, 1, 1], [], []>} : vector<8x32xbf16>, vector<32x128xbf16>, vector<8x128xf32> -> vector<8x128xf32>
    %286 = arith.addf %283, %285 : vector<8x128xf32>
    %287 = arith.negf %286 : vector<8x128xf32>
    %288 = math.exp %287 : vector<8x128xf32>
    %cst_44 = arith.constant 1.000000e+00 : f32
    %289 = vector.broadcast %cst_44 : f32 to vector<8x128xf32>
    %290 = arith.addf %289, %288 : vector<8x128xf32>
    %291 = arith.divf %289, %290 : vector<8x128xf32>
    %292 = math.tanh %286 : vector<8x128xf32>
    %293 = vector.extract_strided_slice %291 {offsets = [0, 32], sizes = [8, 32], strides = [1, 1]} : vector<8x128xf32> to vector<8x32xf32>
    %294 = arith.mulf %293, %260 : vector<8x32xf32>
    %295 = vector.extract_strided_slice %291 {offsets = [0, 0], sizes = [8, 32], strides = [1, 1]} : vector<8x128xf32> to vector<8x32xf32>
    %296 = vector.extract_strided_slice %292 {offsets = [0, 64], sizes = [8, 32], strides = [1, 1]} : vector<8x128xf32> to vector<8x32xf32>
    %297 = arith.mulf %295, %296 : vector<8x32xf32>
    %298 = arith.addf %294, %297 : vector<8x32xf32>
    %299 = vector.extract_strided_slice %291 {offsets = [0, 96], sizes = [8, 32], strides = [1, 1]} : vector<8x128xf32> to vector<8x32xf32>
    %300 = math.tanh %298 : vector<8x32xf32>
    %301 = arith.mulf %299, %300 : vector<8x32xf32>
    %302 = tpu.concatenate %301, %282 in 1 : vector<8x32xf32>, vector<8x32xf32> -> vector<8x64xf32>
    %303 = arith.truncf %302 : vector<8x64xf32> to vector<8x64xbf16>
    %cst_45 = arith.constant dense<0.000000e+00> : vector<8x128xf32>
    %304 = tpu.matmul %303, %6, %cst_45 {dimension_numbers = #tpu.dot_dimension_numbers<[1], [0], [0], [1], [0, 0, 1, 1], [], []>} : vector<8x64xbf16>, vector<64x128xbf16>, vector<8x128xf32> -> vector<8x128xf32>
    %305 = arith.addf %304, %12 : vector<8x128xf32>
    %306 = arith.negf %305 : vector<8x128xf32>
    %307 = math.exp %306 : vector<8x128xf32>
    %cst_46 = arith.constant 1.000000e+00 : f32
    %308 = vector.broadcast %cst_46 : f32 to vector<8x128xf32>
    %309 = arith.addf %308, %307 : vector<8x128xf32>
    %310 = arith.divf %308, %309 : vector<8x128xf32>
    %311 = math.tanh %305 : vector<8x128xf32>
    %312 = vector.extract_strided_slice %310 {offsets = [0, 32], sizes = [8, 32], strides = [1, 1]} : vector<8x128xf32> to vector<8x32xf32>
    %313 = arith.mulf %312, %279 : vector<8x32xf32>
    %314 = vector.extract_strided_slice %310 {offsets = [0, 0], sizes = [8, 32], strides = [1, 1]} : vector<8x128xf32> to vector<8x32xf32>
    %315 = vector.extract_strided_slice %311 {offsets = [0, 64], sizes = [8, 32], strides = [1, 1]} : vector<8x128xf32> to vector<8x32xf32>
    %316 = arith.mulf %314, %315 : vector<8x32xf32>
    %317 = arith.addf %313, %316 : vector<8x32xf32>
    %318 = vector.extract_strided_slice %310 {offsets = [0, 96], sizes = [8, 32], strides = [1, 1]} : vector<8x128xf32> to vector<8x32xf32>
    %319 = math.tanh %317 : vector<8x32xf32>
    %320 = arith.mulf %318, %319 : vector<8x32xf32>
    %321 = vector.extract_strided_slice %10 {offsets = [64, 0], sizes = [8, 128], strides = [1, 1]} : vector<80x128xf32> to vector<8x128xf32>
    %322 = arith.truncf %301 : vector<8x32xf32> to vector<8x32xbf16>
    %cst_47 = arith.constant dense<0.000000e+00> : vector<8x128xf32>
    %323 = tpu.matmul %322, %5, %cst_47 {dimension_numbers = #tpu.dot_dimension_numbers<[1], [0], [0], [1], [0, 0, 1, 1], [], []>} : vector<8x32xbf16>, vector<32x128xbf16>, vector<8x128xf32> -> vector<8x128xf32>
    %324 = arith.addf %321, %323 : vector<8x128xf32>
    %325 = arith.negf %324 : vector<8x128xf32>
    %326 = math.exp %325 : vector<8x128xf32>
    %cst_48 = arith.constant 1.000000e+00 : f32
    %327 = vector.broadcast %cst_48 : f32 to vector<8x128xf32>
    %328 = arith.addf %327, %326 : vector<8x128xf32>
    %329 = arith.divf %327, %328 : vector<8x128xf32>
    %330 = math.tanh %324 : vector<8x128xf32>
    %331 = vector.extract_strided_slice %329 {offsets = [0, 32], sizes = [8, 32], strides = [1, 1]} : vector<8x128xf32> to vector<8x32xf32>
    %332 = arith.mulf %331, %298 : vector<8x32xf32>
    %333 = vector.extract_strided_slice %329 {offsets = [0, 0], sizes = [8, 32], strides = [1, 1]} : vector<8x128xf32> to vector<8x32xf32>
    %334 = vector.extract_strided_slice %330 {offsets = [0, 64], sizes = [8, 32], strides = [1, 1]} : vector<8x128xf32> to vector<8x32xf32>
    %335 = arith.mulf %333, %334 : vector<8x32xf32>
    %336 = arith.addf %332, %335 : vector<8x32xf32>
    %337 = vector.extract_strided_slice %329 {offsets = [0, 96], sizes = [8, 32], strides = [1, 1]} : vector<8x128xf32> to vector<8x32xf32>
    %338 = math.tanh %336 : vector<8x32xf32>
    %339 = arith.mulf %337, %338 : vector<8x32xf32>
    %340 = tpu.concatenate %339, %320 in 1 : vector<8x32xf32>, vector<8x32xf32> -> vector<8x64xf32>
    %341 = arith.truncf %340 : vector<8x64xf32> to vector<8x64xbf16>
    %cst_49 = arith.constant dense<0.000000e+00> : vector<8x128xf32>
    %342 = tpu.matmul %341, %6, %cst_49 {dimension_numbers = #tpu.dot_dimension_numbers<[1], [0], [0], [1], [0, 0, 1, 1], [], []>} : vector<8x64xbf16>, vector<64x128xbf16>, vector<8x128xf32> -> vector<8x128xf32>
    %343 = arith.addf %342, %12 : vector<8x128xf32>
    %344 = arith.negf %343 : vector<8x128xf32>
    %345 = math.exp %344 : vector<8x128xf32>
    %cst_50 = arith.constant 1.000000e+00 : f32
    %346 = vector.broadcast %cst_50 : f32 to vector<8x128xf32>
    %347 = arith.addf %346, %345 : vector<8x128xf32>
    %348 = arith.divf %346, %347 : vector<8x128xf32>
    %349 = math.tanh %343 : vector<8x128xf32>
    %350 = vector.extract_strided_slice %348 {offsets = [0, 32], sizes = [8, 32], strides = [1, 1]} : vector<8x128xf32> to vector<8x32xf32>
    %351 = arith.mulf %350, %317 : vector<8x32xf32>
    %352 = vector.extract_strided_slice %348 {offsets = [0, 0], sizes = [8, 32], strides = [1, 1]} : vector<8x128xf32> to vector<8x32xf32>
    %353 = vector.extract_strided_slice %349 {offsets = [0, 64], sizes = [8, 32], strides = [1, 1]} : vector<8x128xf32> to vector<8x32xf32>
    %354 = arith.mulf %352, %353 : vector<8x32xf32>
    %355 = arith.addf %351, %354 : vector<8x32xf32>
    %356 = vector.extract_strided_slice %348 {offsets = [0, 96], sizes = [8, 32], strides = [1, 1]} : vector<8x128xf32> to vector<8x32xf32>
    %357 = math.tanh %355 : vector<8x32xf32>
    %358 = arith.mulf %356, %357 : vector<8x32xf32>
    %359 = vector.extract_strided_slice %10 {offsets = [72, 0], sizes = [8, 128], strides = [1, 1]} : vector<80x128xf32> to vector<8x128xf32>
    %360 = arith.truncf %339 : vector<8x32xf32> to vector<8x32xbf16>
    %cst_51 = arith.constant dense<0.000000e+00> : vector<8x128xf32>
    %361 = tpu.matmul %360, %5, %cst_51 {dimension_numbers = #tpu.dot_dimension_numbers<[1], [0], [0], [1], [0, 0, 1, 1], [], []>} : vector<8x32xbf16>, vector<32x128xbf16>, vector<8x128xf32> -> vector<8x128xf32>
    %362 = arith.addf %359, %361 : vector<8x128xf32>
    %363 = arith.negf %362 : vector<8x128xf32>
    %364 = math.exp %363 : vector<8x128xf32>
    %cst_52 = arith.constant 1.000000e+00 : f32
    %365 = vector.broadcast %cst_52 : f32 to vector<8x128xf32>
    %366 = arith.addf %365, %364 : vector<8x128xf32>
    %367 = arith.divf %365, %366 : vector<8x128xf32>
    %368 = math.tanh %362 : vector<8x128xf32>
    %369 = vector.extract_strided_slice %367 {offsets = [0, 32], sizes = [8, 32], strides = [1, 1]} : vector<8x128xf32> to vector<8x32xf32>
    %370 = arith.mulf %369, %336 : vector<8x32xf32>
    %371 = vector.extract_strided_slice %367 {offsets = [0, 0], sizes = [8, 32], strides = [1, 1]} : vector<8x128xf32> to vector<8x32xf32>
    %372 = vector.extract_strided_slice %368 {offsets = [0, 64], sizes = [8, 32], strides = [1, 1]} : vector<8x128xf32> to vector<8x32xf32>
    %373 = arith.mulf %371, %372 : vector<8x32xf32>
    %374 = arith.addf %370, %373 : vector<8x32xf32>
    %375 = vector.extract_strided_slice %367 {offsets = [0, 96], sizes = [8, 32], strides = [1, 1]} : vector<8x128xf32> to vector<8x32xf32>
    %376 = math.tanh %374 : vector<8x32xf32>
    %377 = arith.mulf %375, %376 : vector<8x32xf32>
    %378 = tpu.concatenate %377, %358 in 1 : vector<8x32xf32>, vector<8x32xf32> -> vector<8x64xf32>
    %379 = arith.truncf %378 : vector<8x64xf32> to vector<8x64xbf16>
    %cst_53 = arith.constant dense<0.000000e+00> : vector<8x128xf32>
    %380 = tpu.matmul %379, %6, %cst_53 {dimension_numbers = #tpu.dot_dimension_numbers<[1], [0], [0], [1], [0, 0, 1, 1], [], []>} : vector<8x64xbf16>, vector<64x128xbf16>, vector<8x128xf32> -> vector<8x128xf32>
    %381 = arith.addf %380, %12 : vector<8x128xf32>
    %382 = arith.negf %381 : vector<8x128xf32>
    %383 = math.exp %382 : vector<8x128xf32>
    %cst_54 = arith.constant 1.000000e+00 : f32
    %384 = vector.broadcast %cst_54 : f32 to vector<8x128xf32>
    %385 = arith.addf %384, %383 : vector<8x128xf32>
    %386 = arith.divf %384, %385 : vector<8x128xf32>
    %387 = math.tanh %381 : vector<8x128xf32>
    %388 = vector.extract_strided_slice %386 {offsets = [0, 32], sizes = [8, 32], strides = [1, 1]} : vector<8x128xf32> to vector<8x32xf32>
    %389 = arith.mulf %388, %355 : vector<8x32xf32>
    %390 = vector.extract_strided_slice %386 {offsets = [0, 0], sizes = [8, 32], strides = [1, 1]} : vector<8x128xf32> to vector<8x32xf32>
    %391 = vector.extract_strided_slice %387 {offsets = [0, 64], sizes = [8, 32], strides = [1, 1]} : vector<8x128xf32> to vector<8x32xf32>
    %392 = arith.mulf %390, %391 : vector<8x32xf32>
    %393 = arith.addf %389, %392 : vector<8x32xf32>
    %394 = vector.extract_strided_slice %386 {offsets = [0, 96], sizes = [8, 32], strides = [1, 1]} : vector<8x128xf32> to vector<8x32xf32>
    %395 = math.tanh %393 : vector<8x32xf32>
    %396 = arith.mulf %394, %395 : vector<8x32xf32>
    %cst_55 = arith.constant dense<0.000000e+00> : vector<8x128xf32>
    %397 = tpu.matmul %396, %4, %cst_55 {dimension_numbers = #tpu.dot_dimension_numbers<[1], [0], [0], [1], [0, 0, 1, 1], [], []>} : vector<8x32xf32>, vector<32x128xf32>, vector<8x128xf32> -> vector<8x128xf32>
    %398 = vector.broadcast %3 : vector<1x128xf32> to vector<8x128xf32>
    %399 = arith.addf %397, %398 : vector<8x128xf32>
    %cst_56 = arith.constant dense<0xFF800000> : vector<8xf32>
    %400 = vector.multi_reduction <maximumf>, %399, %cst_56 [1] : vector<8x128xf32> to vector<8xf32>
    %401 = vector.shape_cast %400 : vector<8xf32> to vector<8x1xf32>
    %402 = vector.broadcast %401 : vector<8x1xf32> to vector<8x128xf32>
    %403 = arith.subf %399, %402 : vector<8x128xf32>
    %404 = math.exp %403 : vector<8x128xf32>
    %cst_57 = arith.constant dense<0.000000e+00> : vector<8xf32>
    %405 = vector.multi_reduction <add>, %404, %cst_57 [1] : vector<8x128xf32> to vector<8xf32>
    %406 = vector.shape_cast %405 : vector<8xf32> to vector<8x1xf32>
    %407 = math.log %406 : vector<8x1xf32>
    %408 = arith.addf %407, %401 : vector<8x1xf32>
    %409 = vector.broadcast %408 : vector<8x1xf32> to vector<8x128xf32>
    %410 = arith.subf %399, %409 : vector<8x128xf32>
    %c0_58 = arith.constant 0 : index
    %c0_59 = arith.constant 0 : index
    %411 = vector.load %arg3[%c0_58, %c0_59] : memref<8x128xf32, #tpu.memory_space<vmem>>, vector<8x128xf32>
    tpu.vector_store %arg3[%c0_58, %c0_59], %410 {strides = array<i32>} : memref<8x128xf32, #tpu.memory_space<vmem>>, vector<8x128xf32>,
    return
  }
}

</mosaic_0001>

<bundles_post_ra>
// kernel: one_dim_cnn_lstm_forward.1
= control target key start
LH: loop header
LB: loop body
LE: loop exit
PB: predicated region body
PF: predicated region fallthrough
CT: control target
= control target key end

     0   :  { %vm82_vm0 = vcmask 1043456   ;;  %vm51_vm1 = vcmask 162816   ;;  %v2392_v2 = vmov 0.0   ;;  %vm2393_vm2 = vmmov 0   ;;  %s2395_s16 = smov 64   ;;  %s2396_s17 = smov 32   ;;  %s2947_s2 = inlined_call_operand.vmem [shape: f32[64,128], index: 2, kind: input, shape index: {}]   ;;  %s2948_s0 = inlined_call_operand.vmem [shape: f32[80,20], index: 0, kind: input, shape index: {}]   ;;  %s2949_s1 = inlined_call_operand.vmem [shape: bf16[96,128], index: 1, kind: input, shape index: {}]   ;;  %s2950_s3 = inlined_call_operand.vmem [shape: f32[8,128], index: 3, kind: output, shape index: {}]  }
   0x1   :  { %v17_v0 = vld [vmem:[%s2947_s2 + $0x10] sm:$0xf]  ;;  %v16_v1 = vld [vmem:[%s2947_s2 + $0x8] sm:$0xff]  ;;  %2007 = vmatprep.subr.bf16.mxu1 %v2392_v2  ;;  %2015 = vmatprep.mubr.msk.bf16.mxu1 %vm2393_vm2, %v2392_v2  ;;  %v37_v3 = vld [vmem:[%s2948_s0] sm:$0xff]  ;;  %v2394_v16 = vmov 0   ;;  %vm217_vm3 = vcmask 261120  }
   0x2   :  { %1978 = vmatprep.subr.msk.mxu0 %vm82_vm0, %v17_v0  ;;  %v15_v4 = vld [vmem:[%s2947_s2] sm:$0xff]  ;;  %1984 = vmatprep.mubr.msk.f32.mxu0 %vm51_vm1, %v37_v3  ;;  %v38_v5 = vld [vmem:[%s2948_s0 + $0x8] sm:$0xff]  ;;  %v39_v7 = vld [vmem:[%s2948_s0 + $0x10] sm:$0xff]  ;;  %vm316_vm4 = vcmask 523264  }
   0x3   :  { %1979 = vmatpush3.msk.msra.mxu0 %vm82_vm0, %v17_v0  ;;  %v2439_v6 = vld [vmem:[%s2949_s1 + $0x8] sm:$0xff]   ;;  %v40_v8 = vld [vmem:[%s2948_s0 + $0x18] sm:$0xff]  ;;  %v2450_v9 = vld [vmem:[%s2949_s1] sm:$0xff]  }
   0x4   :  { %1980 = vmatprep.subr.mxu0 %v16_v1  ;;  %v41_v10 = vld [vmem:[%s2948_s0 + $0x20] sm:$0xff]  ;;  %v42_v11 = vld [vmem:[%s2948_s0 + $0x28] sm:$0xff]  ;;  %v43_v12 = vld [vmem:[%s2948_s0 + $0x30] sm:$0xff] }
   0x5   :  { %1981 = vmatpush3.msra.mxu0 %v16_v1  ;;  %v44_v13 = vld [vmem:[%s2948_s0 + $0x38] sm:$0xff]  ;;  %v45_v14 = vld [vmem:[%s2948_s0 + $0x40] sm:$0xff]  ;;  %v46_v15 = vld [vmem:[%s2948_s0 + $0x48] sm:$0xff] }
   0x6   :  { %1982 = vmatprep.subr.mxu0 %v15_v4  ;;  %v1820_v17 = vld [vmem:[%s2947_s2 + $0x18] ss:$0 sm:$0xff]  ;;  %v2521_v53 = vld [vmem:[%s2949_s1 + $0x28] sm:$0xff]   ;;  %v2527_v54 = vld [vmem:[%s2949_s1 + $0x20] sm:$0xff]  }
   0x7   :  { %1983 = vmatpush3.msra.mxu0 %v15_v4  ;;  %2008 = vmatpush3.bf16.msra.mxu1 %v2521_v53  ;;  %v2534_v55 = vld [vmem:[%s2949_s1 + $0x18] sm:$0xff]   ;;  %v2543_v57 = vld [vmem:[%s2949_s1 + $0x10] sm:$0xff]  }
   0x8   :  { %1985 = vmatmul.mubr.msk.f32.vlgmr.msra.gmra.mxu0 %vm51_vm1, %v38_v5  ;;  %1999 = vmatprep.subr.bf16.mxu0 %v2392_v2  ;;  %v2571_v1 = vld [vmem:[%s2947_s2 + $0x19] ss:$0 sm:$0xff] }
   0x9   :  { %2000 = vmatpush3.bf16.msra.mxu0 %v2439_v6  ;;  %1987 = vmatprep.mubr.msk.f32.mxu0 %vm51_vm1, %v39_v7 }
   0xa   :  { %2001 = vmatprep.subr.bf16.mxu0 %v2392_v2  ;;  %2009 = vmatprep.subr.bf16.mxu1 %v2392_v2 }
   0xb   :  { %2010 = vmatpush3.bf16.msra.mxu1 %v2527_v54 }
   0xc   :  { %1988 = vmatmul.mubr.msk.f32.gmra.mxu0 %vm51_vm1, %v40_v8  ;;  %2011 = vmatprep.subr.bf16.mxu1 %v2392_v2 }
   0xd   :  { %1990 = vmatprep.mubr.msk.f32.mxu0 %vm51_vm1, %v41_v10  ;;  %2002 = vmatpush3.bf16.msra.mxu0 %v2450_v9 }
   0xe   :  { %2019 = vmatprep.subr.bf16.mxu0 %v2392_v2 }
   0xf   :  { %2012 = vmatpush3.bf16.msra.mxu1 %v2534_v55 }
  0x10   :  { %1991 = vmatmul.mubr.msk.f32.gmra.mxu0 %vm51_vm1, %v42_v11  ;;  %2013 = vmatprep.subr.bf16.mxu1 %v2392_v2 }
  0x11   :  { %1993 = vmatprep.mubr.msk.f32.mxu0 %vm51_vm1, %v43_v12 }
  0x13   :  { %2014 = vmatpush3.bf16.msra.mxu1 %v2543_v57 }
  0x14   :  { %1994 = vmatmul.mubr.msk.f32.gmra.mxu0 %vm51_vm1, %v44_v13  ;;  %2027 = vmatprep.subr.bf16.mxu1 %v2392_v2 }
  0x15   :  { %1996 = vmatprep.mubr.msk.f32.mxu0 %vm51_vm1, %v45_v14 }
  0x18   :  { %1997 = vmatmul.mubr.msk.f32.gmra.mxu0 %vm51_vm1, %v46_v15 }
  0x19   :  { %2003 = vmatprep.mubr.msk.bf16.mxu0 %vm2393_vm2, %v2392_v2 }
  0x1c   :  { %2004 = vmatmul.mubr.bf16.vlgmr.msra.gmra.mxu0 %v2394_v16 }
  0x1d   :  { %2020 = vmatpush3.bf16.msra.mxu0 %v2439_v6  ;;  %2023 = vmatprep.mubr.msk.bf16.mxu0 %vm2393_vm2, %v2392_v2 }
  0x1e   :  { %2021 = vmatprep.subr.bf16.mxu0 %v2392_v2 }
  0x21   :  { %2022 = vmatpush3.bf16.msra.mxu0 %v2450_v9 }
  0x22   :  { %2039 = vmatprep.subr.bf16.mxu0 %v2392_v2 }
  0xc8   :  { %v1986_v18 = vpop.f32.mrf.mxu0 }
  0xc9   :  { %v2495_v19 = vadd.f32 %v1986_v18, %v1820_v17 }
  0xca   :  { %v152_v20 = vpop.f32.mrf.mxu0 }
  0xcb   :  { %v153_v36 = vadd.f32 %v1820_v17, %v152_v20 }
  0xcc   :  { %v1989_v21 = vpop.f32.mrf.mxu0 }
  0xcd   :  { %v2497_v22 = vadd.f32 %v1989_v21, %v1820_v17 }
  0xce   :  { %v162_v23 = vpop.f32.mrf.mxu0 }
  0xcf   :  { %v2499_v24 = vadd.f32 %v1820_v17, %v162_v23 }
  0xd0   :  { %v1992_v25 = vpop.f32.mrf.mxu0 }
  0xd1   :  { %v2501_v26 = vadd.f32 %v1992_v25, %v1820_v17 }
  0xd2   :  { %v172_v27 = vpop.f32.mrf.mxu0 }
  0xd3   :  { %v2503_v28 = vadd.f32 %v1820_v17, %v172_v27 }
  0xd4   :  { %v1995_v29 = vpop.f32.mrf.mxu0 }
  0xd5   :  { %v2505_v30 = vadd.f32 %v1995_v29, %v1820_v17 }
  0xd6   :  { %v182_v31 = vpop.f32.mrf.mxu0 }
  0xd7   :  { %v2507_v32 = vadd.f32 %v1820_v17, %v182_v31 }
  0xd8   :  { %v1998_v33 = vpop.f32.mrf.mxu0 }
  0xd9   :  { %v2509_v34 = vadd.f32 %v1998_v33, %v1820_v17 }
  0xda   :  { %v192_v35 = vpop.f32.mrf.mxu0 }
  0xdb   :  { %v2511_v37 = vadd.f32 %v1820_v17, %v192_v35 }
  0xdc   :  { %v255_v38 = vpop.f32.mrf.mxu0 }
  0xdd   :  { %v261_v39 = vadd.f32 %v255_v38, %v153_v36 }
  0xde   :  { %v2005_v40 = vpop.f32.mrf.mxu0 }
  0xdf   :  { %2221 = vtanh.f32 %v261_v39  ;;  %v1835_v44 = vmul.f32 -1.442695, %v261_v39 }
  0xe0   :  { %v258_v41 = vpop.f32.mrf.mxu0 }
  0xe1   :  { %2223 = vpow2.f32 %v1835_v44 }
  0xe2   :  { %v2006_v42 = vpop.f32.mrf.mxu0 }
  0xec   :  { %v2222_v43 = vpop.eup %2221 }
  0xed   :  { %271 = vrot.lane.b32.xlu0 %v2222_v43, %s2395_s16 }
  0xee   :  { %v2224_v45 = vpop.eup %2223 }
  0xef   :  { %v265_v46 = vadd.f32 1.0, %v2224_v45 }
  0xf1   :  { %2225 = vrcp.f32 %v265_v46 }
  0xfe   :  { %v2226_v47 = vpop.eup %2225 }
  0xff   :  { %v269_v50 = vmul.f32 0.0, %v2226_v47 }
 0x15f   :  { %v272_v48 = vpop.permute.xlu0 %271 }
 0x160   :  { %v274_v49 = vmul.f32 %v2226_v47, %v272_v48 }
 0x162   :  { %276 = vrot.lane.b32.xlu0 %v274_v49, %s2396_s17 }
 0x1d4   :  { %v277_v51 = vpop.permute.xlu0 %276 }
 0x1d5   :  { %v2515_v52 = vadd.f32 %v277_v51, %v269_v50 }
 0x1d7   :  { %2227 = vtanh.f32 %v2515_v52 }
 0x1e4   :  { %v2228_v56 = vpop.eup %2227 }
 0x1e5   :  { %282 = vrot.lane.b32.xlu1 %v2228_v56, %s2395_s16 }
 0x257   :  { %v283_v58 = vpop.permute.xlu1 %282 }
 0x258   :  { %v285_v59 = vmul.f32 %v2226_v47, %v283_v58 }
 0x25a   :  { %v384_v60 = vpack.c.bf16 %v285_v59, %v285_v59  ;;  %287 = vrot.lane.b32.xlu1 %v285_v59, %s2396_s17 }
 0x25c   :  { %386 = vrot.lane.b32.xlu0 %v384_v60, %s2396_s17 }
 0x2cc   :  { %v288_v61 = vpop.permute.xlu1 %287 }
 0x2cd   :  { %v290_v62 = vsel %vm217_vm3, %v288_v61, 0.0 }
 0x2ce   :  { %v291_v63 = vpack.c.bf16 %v290_v62, %v290_v62  ;;  %v387_v0 = vpop.permute.xlu0 %386 }
 0x2cf   :  { %2024 = vmatmul.mubr.msk.bf16.vlgmr.msra.gmra.mxu0 %vm217_vm3, %v387_v0 }
 0x2d0   :  { %2016 = vmatmul.mubr.msk.bf16.vlgmr.msra.gmra.mxu1 %vm316_vm4, %v291_v63  ;;  %2040 = vmatpush3.bf16.msra.mxu0 %v2439_v6 }
 0x2d1   :  { %2028 = vmatpush3.bf16.msra.mxu1 %v2521_v53  ;;  %2041 = vmatprep.subr.bf16.mxu0 %v2392_v2 }
 0x2d2   :  { %2029 = vmatprep.subr.bf16.mxu1 %v2392_v2  ;;  %2035 = vmatprep.mubr.msk.bf16.mxu1 %vm2393_vm2, %v2392_v2 }
 0x2d3   :  { %2043 = vmatprep.mubr.msk.bf16.mxu0 %vm2393_vm2, %v2392_v2 }
 0x2d4   :  { %2042 = vmatpush3.bf16.msra.mxu0 %v2450_v9 }
 0x2d5   :  { %2030 = vmatpush3.bf16.msra.mxu1 %v2527_v54  ;;  %2047 = vmatprep.subr.bf16.mxu0 %v2392_v2 }
 0x2d6   :  { %2031 = vmatprep.subr.bf16.mxu1 %v2392_v2 }
 0x2d9   :  { %2032 = vmatpush3.bf16.msra.mxu1 %v2534_v55 }
 0x2da   :  { %2033 = vmatprep.subr.bf16.mxu1 %v2392_v2 }
 0x2dd   :  { %2034 = vmatpush3.bf16.msra.mxu1 %v2543_v57 }
 0x2de   :  { %2059 = vmatprep.subr.bf16.mxu1 %v2392_v2 }
 0x38f   :  { %v425_v3 = vpop.f32.mrf.mxu0 }
 0x390   :  { %v431_v4 = vadd.f32 %v425_v3, %v2495_v19  ;;  %v354_v5 = vpop.f32.mrf.mxu1 }
 0x391   :  { %v355_v7 = vadd.f32 %v2571_v1, %v354_v5  ;;  %v2025_v8 = vpop.f32.mrf.mxu0 }
 0x392   :  { %2229 = vtanh.f32 %v431_v4  ;;  %v2017_v10 = vpop.f32.mrf.mxu1  ;;  %v1843_v17 = vmul.f32 -1.442695, %v431_v4 }
 0x393   :  { %2231 = vtanh.f32 %v355_v7  ;;  %v428_v11 = vpop.f32.mrf.mxu0  ;;  %v1841_v18 = vmul.f32 -1.442695, %v355_v7 }
 0x394   :  { %v357_v12 = vpop.f32.mrf.mxu1  ;;  %2233 = vpow2.f32 %v1843_v17 }
 0x395   :  { %v2026_v13 = vpop.f32.mrf.mxu0  ;;  %2235 = vpow2.f32 %v1841_v18 }
 0x396   :  { %v2018_v14 = vpop.f32.mrf.mxu1 }
 0x39f   :  { %v2230_v15 = vpop.eup %2229 }
 0x3a0   :  { %v2232_v16 = vpop.eup %2231  ;;  %441 = vrot.lane.b32.xlu0 %v2230_v15, %s2395_s16 }
 0x3a1   :  { %369 = vrot.lane.b32.xlu1 %v2232_v16, %s2395_s16  ;;  %v2234_v19 = vpop.eup %2233 }
 0x3a2   :  { %v2236_v20 = vpop.eup %2235  ;;  %v435_v21 = vadd.f32 1.0, %v2234_v19 }
 0x3a3   :  { %v363_v23 = vadd.f32 1.0, %v2236_v20 }
 0x3a4   :  { %2237 = vrcp.f32 %v435_v21 }
 0x3a5   :  { %2239 = vrcp.f32 %v363_v23 }
 0x3b1   :  { %v2238_v25 = vpop.eup %2237 }
 0x3b2   :  { %v2240_v29 = vpop.eup %2239  ;;  %v439_v36 = vmul.f32 %v2238_v25, %v2515_v52 }
 0x3b3   :  { %v367_v39 = vmul.f32 0.0, %v2240_v29 }
 0x412   :  { %v442_v27 = vpop.permute.xlu0 %441 }
 0x413   :  { %v444_v31 = vmul.f32 %v2238_v25, %v442_v27  ;;  %v370_v33 = vpop.permute.xlu1 %369 }
 0x414   :  { %v372_v35 = vmul.f32 %v2240_v29, %v370_v33 }
 0x415   :  { %446 = vrot.lane.b32.xlu0 %v444_v31, %s2396_s17 }
 0x416   :  { %374 = vrot.lane.b32.xlu1 %v372_v35, %s2396_s17 }
 0x487   :  { %v447_v38 = vpop.permute.xlu0 %446 }
 0x488   :  { %v2580_v40 = vadd.f32 %v447_v38, %v439_v36  ;;  %v375_v41 = vpop.permute.xlu1 %374 }
 0x489   :  { %v2582_v42 = vadd.f32 %v375_v41, %v367_v39 }
 0x48a   :  { %2241 = vtanh.f32 %v2580_v40 }
 0x48b   :  { %2243 = vtanh.f32 %v2582_v42 }
 0x497   :  { %v2242_v43 = vpop.eup %2241 }
 0x498   :  { %v2244_v44 = vpop.eup %2243  ;;  %452 = vrot.lane.b32.xlu0 %v2242_v43, %s2395_s16 }
 0x499   :  { %380 = vrot.lane.b32.xlu1 %v2244_v44, %s2395_s16 }
 0x50a   :  { %v453_v45 = vpop.permute.xlu0 %452 }
 0x50b   :  { %v455_v46 = vmul.f32 %v2238_v25, %v453_v45  ;;  %v381_v47 = vpop.permute.xlu1 %380 }
 0x50c   :  { %v383_v48 = vmul.f32 %v2240_v29, %v381_v47 }
 0x50d   :  { %457 = vrot.lane.b32.xlu1 %v455_v46, %s2396_s17  ;;  %v533_v49 = vpack.c.bf16 %v455_v46, %v455_v46 }
 0x50e   :  { %461 = vrot.lane.b32.xlu0 %v383_v48, %s2395_s16 }
 0x511   :  { %535 = vrot.lane.b32.xlu1 %v533_v49, %s2396_s17 }
 0x57f   :  { %v458_v50 = vpop.permute.xlu1 %457 }
 0x580   :  { %v462_v51 = vpop.permute.xlu0 %461 }
 0x581   :  { %v464_v52 = vsel %vm217_vm3, %v458_v50, %v462_v51 }
 0x582   :  { %v465_v56 = vpack.c.bf16 %v464_v52, %v464_v52 }
 0x583   :  { %v536_v58 = vpop.permute.xlu1 %535 }
 0x584   :  { %2036 = vmatmul.mubr.msk.bf16.vlgmr.msra.gmra.mxu1 %vm316_vm4, %v465_v56  ;;  %2044 = vmatmul.mubr.msk.bf16.vlgmr.msra.gmra.mxu0 %vm217_vm3, %v536_v58 }
 0x585   :  { %2048 = vmatpush3.bf16.msra.mxu0 %v2521_v53  ;;  %2060 = vmatpush3.bf16.msra.mxu1 %v2439_v6 }
 0x586   :  { %2049 = vmatprep.subr.bf16.mxu0 %v2392_v2  ;;  %2061 = vmatprep.subr.bf16.mxu1 %v2392_v2 }
 0x587   :  { %2055 = vmatprep.mubr.msk.bf16.mxu0 %vm2393_vm2, %v2392_v2  ;;  %2063 = vmatprep.mubr.msk.bf16.mxu1 %vm2393_vm2, %v2392_v2 }
 0x589   :  { %2050 = vmatpush3.bf16.msra.mxu0 %v2527_v54  ;;  %2062 = vmatpush3.bf16.msra.mxu1 %v2450_v9 }
 0x58a   :  { %2051 = vmatprep.subr.bf16.mxu0 %v2392_v2  ;;  %2067 = vmatprep.subr.bf16.mxu1 %v2392_v2 }
 0x58d   :  { %2052 = vmatpush3.bf16.msra.mxu0 %v2534_v55 }
 0x58e   :  { %2053 = vmatprep.subr.bf16.mxu0 %v2392_v2 }
 0x591   :  { %2054 = vmatpush3.bf16.msra.mxu0 %v2543_v57 }
 0x592   :  { %2079 = vmatprep.subr.bf16.mxu0 %v2392_v2 }
 0x644   :  { %v503_v59 = vpop.f32.mrf.mxu1  ;;  %v574_v60 = vpop.f32.mrf.mxu0 }
 0x645   :  { %v504_v61 = vadd.f32 %v2571_v1, %v503_v59  ;;  %v580_v62 = vadd.f32 %v574_v60, %v2499_v24 }
 0x646   :  { %v2037_v63 = vpop.f32.mrf.mxu1  ;;  %v2045_v0 = vpop.f32.mrf.mxu0 }
 0x647   :  { %2245 = vtanh.f32 %v504_v61  ;;  %v1845_v11 = vmul.f32 -1.442695, %v504_v61  ;;  %v1847_v12 = vmul.f32 -1.442695, %v580_v62 }
 0x648   :  { %2247 = vtanh.f32 %v580_v62  ;;  %v506_v3 = vpop.f32.mrf.mxu1  ;;  %v577_v4 = vpop.f32.mrf.mxu0 }
 0x649   :  { %2249 = vpow2.f32 %v1845_v11 }
 0x64a   :  { %v2038_v5 = vpop.f32.mrf.mxu1  ;;  %v2046_v7 = vpop.f32.mrf.mxu0  ;;  %2251 = vpow2.f32 %v1847_v12 }
 0x654   :  { %v2246_v8 = vpop.eup %2245 }
 0x655   :  { %v2248_v10 = vpop.eup %2247  ;;  %518 = vrot.lane.b32.xlu0 %v2246_v8, %s2395_s16 }
 0x656   :  { %590 = vrot.lane.b32.xlu1 %v2248_v10, %s2395_s16  ;;  %v2250_v13 = vpop.eup %2249 }
 0x657   :  { %v2252_v24 = vpop.eup %2251  ;;  %v512_v14 = vadd.f32 1.0, %v2250_v13 }
 0x658   :  { %v584_v15 = vadd.f32 1.0, %v2252_v24 }
 0x659   :  { %2253 = vrcp.f32 %v512_v14 }
 0x65a   :  { %2255 = vrcp.f32 %v584_v15 }
 0x666   :  { %v2254_v16 = vpop.eup %2253 }
 0x667   :  { %v2256_v18 = vpop.eup %2255  ;;  %v516_v23 = vmul.f32 %v2254_v16, %v2582_v42 }
 0x668   :  { %v588_v27 = vmul.f32 %v2256_v18, %v2580_v40 }
 0x6c7   :  { %v519_v17 = vpop.permute.xlu0 %518 }
 0x6c8   :  { %v521_v19 = vmul.f32 %v2254_v16, %v519_v17  ;;  %v591_v20 = vpop.permute.xlu1 %590 }
 0x6c9   :  { %v593_v21 = vmul.f32 %v2256_v18, %v591_v20 }
 0x6ca   :  { %523 = vrot.lane.b32.xlu0 %v521_v19, %s2396_s17 }
 0x6cb   :  { %595 = vrot.lane.b32.xlu1 %v593_v21, %s2396_s17 }
 0x73c   :  { %v524_v25 = vpop.permute.xlu0 %523 }
 0x73d   :  { %v2618_v29 = vadd.f32 %v524_v25, %v516_v23  ;;  %v596_v31 = vpop.permute.xlu1 %595 }
 0x73e   :  { %v2620_v33 = vadd.f32 %v596_v31, %v588_v27 }
 0x73f   :  { %2257 = vtanh.f32 %v2618_v29 }
 0x740   :  { %2259 = vtanh.f32 %v2620_v33 }
 0x74c   :  { %v2258_v35 = vpop.eup %2257 }
 0x74d   :  { %v2260_v36 = vpop.eup %2259  ;;  %529 = vrot.lane.b32.xlu0 %v2258_v35, %s2395_s16 }
 0x74e   :  { %601 = vrot.lane.b32.xlu1 %v2260_v36, %s2395_s16 }
 0x7bf   :  { %v530_v38 = vpop.permute.xlu0 %529 }
 0x7c0   :  { %v532_v39 = vmul.f32 %v2254_v16, %v530_v38  ;;  %v602_v41 = vpop.permute.xlu1 %601 }
 0x7c1   :  { %v604_v42 = vmul.f32 %v2256_v18, %v602_v41 }
 0x7c2   :  { %610 = vrot.lane.b32.xlu1 %v532_v39, %s2395_s16 }
 0x7c3   :  { %606 = vrot.lane.b32.xlu0 %v604_v42, %s2396_s17  ;;  %v682_v40 = vpack.c.bf16 %v604_v42, %v604_v42 }
 0x7c7   :  { %684 = vrot.lane.b32.xlu0 %v682_v40, %s2396_s17 }
 0x834   :  { %v611_v43 = vpop.permute.xlu1 %610 }
 0x835   :  { %v607_v44 = vpop.permute.xlu0 %606 }
 0x836   :  { %v613_v45 = vsel %vm217_vm3, %v607_v44, %v611_v43 }
 0x837   :  { %v614_v46 = vpack.c.bf16 %v613_v45, %v613_v45 }
 0x839   :  { %v685_v47 = vpop.permute.xlu0 %684  ;;  %2056 = vmatmul.mubr.msk.bf16.vlgmr.msra.gmra.mxu0 %vm316_vm4, %v614_v46 }
 0x83a   :  { %2064 = vmatmul.mubr.msk.bf16.vlgmr.msra.gmra.mxu1 %vm217_vm3, %v685_v47  ;;  %2080 = vmatpush3.bf16.msra.mxu0 %v2439_v6 }
 0x83b   :  { %2068 = vmatpush3.bf16.msra.mxu1 %v2521_v53  ;;  %2081 = vmatprep.subr.bf16.mxu0 %v2392_v2 }
 0x83c   :  { %2069 = vmatprep.subr.bf16.mxu1 %v2392_v2  ;;  %2075 = vmatprep.mubr.msk.bf16.mxu1 %vm2393_vm2, %v2392_v2 }
 0x83d   :  { %2083 = vmatprep.mubr.msk.bf16.mxu0 %vm2393_vm2, %v2392_v2 }
 0x83e   :  { %2082 = vmatpush3.bf16.msra.mxu0 %v2450_v9 }
 0x83f   :  { %2070 = vmatpush3.bf16.msra.mxu1 %v2527_v54  ;;  %2087 = vmatprep.subr.bf16.mxu0 %v2392_v2 }
 0x840   :  { %2071 = vmatprep.subr.bf16.mxu1 %v2392_v2 }
 0x843   :  { %2072 = vmatpush3.bf16.msra.mxu1 %v2534_v55 }
 0x844   :  { %2073 = vmatprep.subr.bf16.mxu1 %v2392_v2 }
 0x847   :  { %2074 = vmatpush3.bf16.msra.mxu1 %v2543_v57 }
 0x848   :  { %2099 = vmatprep.subr.bf16.mxu1 %v2392_v2 }
 0x8f9   :  { %v652_v48 = vpop.f32.mrf.mxu0 }
 0x8fa   :  { %v653_v49 = vadd.f32 %v2571_v1, %v652_v48  ;;  %v723_v50 = vpop.f32.mrf.mxu1 }
 0x8fb   :  { %v729_v51 = vadd.f32 %v723_v50, %v2497_v22  ;;  %v2057_v52 = vpop.f32.mrf.mxu0 }
 0x8fc   :  { %2261 = vtanh.f32 %v653_v49  ;;  %v2065_v56 = vpop.f32.mrf.mxu1  ;;  %v1849_v0 = vmul.f32 -1.442695, %v653_v49 }
 0x8fd   :  { %2263 = vtanh.f32 %v729_v51  ;;  %v655_v58 = vpop.f32.mrf.mxu0  ;;  %v1851_v3 = vmul.f32 -1.442695, %v729_v51 }
 0x8fe   :  { %v726_v59 = vpop.f32.mrf.mxu1  ;;  %2265 = vpow2.f32 %v1849_v0 }
 0x8ff   :  { %v2058_v60 = vpop.f32.mrf.mxu0  ;;  %2267 = vpow2.f32 %v1851_v3 }
 0x900   :  { %v2066_v61 = vpop.f32.mrf.mxu1 }
 0x909   :  { %v2262_v62 = vpop.eup %2261 }
 0x90a   :  { %v2264_v63 = vpop.eup %2263  ;;  %667 = vrot.lane.b32.xlu1 %v2262_v62, %s2395_s16 }
 0x90b   :  { %739 = vrot.lane.b32.xlu0 %v2264_v63, %s2395_s16  ;;  %v2266_v4 = vpop.eup %2265 }
 0x90c   :  { %v2268_v22 = vpop.eup %2267  ;;  %v661_v5 = vadd.f32 1.0, %v2266_v4 }
 0x90d   :  { %v733_v7 = vadd.f32 1.0, %v2268_v22 }
 0x90e   :  { %2269 = vrcp.f32 %v661_v5 }
 0x90f   :  { %2271 = vrcp.f32 %v733_v7 }
 0x91b   :  { %v2270_v8 = vpop.eup %2269 }
 0x91c   :  { %v2272_v11 = vpop.eup %2271  ;;  %v665_v14 = vmul.f32 %v2270_v8, %v2618_v29 }
 0x91d   :  { %v737_v16 = vmul.f32 %v2272_v11, %v2620_v33 }
 0x97c   :  { %v668_v10 = vpop.permute.xlu1 %667 }
 0x97d   :  { %v670_v12 = vmul.f32 %v2270_v8, %v668_v10  ;;  %v740_v13 = vpop.permute.xlu0 %739 }
 0x97e   :  { %v742_v24 = vmul.f32 %v2272_v11, %v740_v13 }
 0x97f   :  { %672 = vrot.lane.b32.xlu1 %v670_v12, %s2396_s17 }
 0x980   :  { %744 = vrot.lane.b32.xlu0 %v742_v24, %s2396_s17 }
 0x9f1   :  { %v673_v15 = vpop.permute.xlu1 %672 }
 0x9f2   :  { %v2656_v17 = vadd.f32 %v673_v15, %v665_v14  ;;  %v745_v18 = vpop.permute.xlu0 %744 }
 0x9f3   :  { %v2658_v19 = vadd.f32 %v745_v18, %v737_v16 }
 0x9f4   :  { %2273 = vtanh.f32 %v2656_v17 }
 0x9f5   :  { %2275 = vtanh.f32 %v2658_v19 }
 0xa01   :  { %v2274_v20 = vpop.eup %2273 }
 0xa02   :  { %v2276_v21 = vpop.eup %2275  ;;  %678 = vrot.lane.b32.xlu1 %v2274_v20, %s2395_s16 }
 0xa03   :  { %750 = vrot.lane.b32.xlu0 %v2276_v21, %s2395_s16 }
 0xa74   :  { %v679_v23 = vpop.permute.xlu1 %678 }
 0xa75   :  { %v681_v25 = vmul.f32 %v2270_v8, %v679_v23  ;;  %v751_v27 = vpop.permute.xlu0 %750 }
 0xa76   :  { %v753_v29 = vmul.f32 %v2272_v11, %v751_v27 }
 0xa77   :  { %759 = vrot.lane.b32.xlu0 %v681_v25, %s2395_s16 }
 0xa78   :  { %755 = vrot.lane.b32.xlu1 %v753_v29, %s2396_s17  ;;  %v831_v31 = vpack.c.bf16 %v753_v29, %v753_v29 }
 0xa7c   :  { %833 = vrot.lane.b32.xlu1 %v831_v31, %s2396_s17 }
 0xae9   :  { %v760_v33 = vpop.permute.xlu0 %759 }
 0xaea   :  { %v756_v35 = vpop.permute.xlu1 %755 }
 0xaeb   :  { %v762_v36 = vsel %vm217_vm3, %v756_v35, %v760_v33 }
 0xaec   :  { %v763_v38 = vpack.c.bf16 %v762_v36, %v762_v36 }
 0xaee   :  { %2076 = vmatmul.mubr.msk.bf16.vlgmr.msra.gmra.mxu1 %vm316_vm4, %v763_v38  ;;  %v834_v39 = vpop.permute.xlu1 %833 }
 0xaef   :  { %2084 = vmatmul.mubr.msk.bf16.vlgmr.msra.gmra.mxu0 %vm217_vm3, %v834_v39  ;;  %2100 = vmatpush3.bf16.msra.mxu1 %v2439_v6 }
 0xaf0   :  { %2088 = vmatpush3.bf16.msra.mxu0 %v2521_v53  ;;  %2101 = vmatprep.subr.bf16.mxu1 %v2392_v2 }
 0xaf1   :  { %2089 = vmatprep.subr.bf16.mxu0 %v2392_v2  ;;  %2095 = vmatprep.mubr.msk.bf16.mxu0 %vm2393_vm2, %v2392_v2 }
 0xaf2   :  { %2103 = vmatprep.mubr.msk.bf16.mxu1 %vm2393_vm2, %v2392_v2 }
 0xaf3   :  { %2102 = vmatpush3.bf16.msra.mxu1 %v2450_v9 }
 0xaf4   :  { %2090 = vmatpush3.bf16.msra.mxu0 %v2527_v54  ;;  %2107 = vmatprep.subr.bf16.mxu1 %v2392_v2 }
 0xaf5   :  { %2091 = vmatprep.subr.bf16.mxu0 %v2392_v2 }
 0xaf8   :  { %2092 = vmatpush3.bf16.msra.mxu0 %v2534_v55 }
 0xaf9   :  { %2093 = vmatprep.subr.bf16.mxu0 %v2392_v2 }
 0xafc   :  { %2094 = vmatpush3.bf16.msra.mxu0 %v2543_v57 }
 0xafd   :  { %2119 = vmatprep.subr.bf16.mxu0 %v2392_v2 }
 0xbae   :  { %v801_v41 = vpop.f32.mrf.mxu1 }
 0xbaf   :  { %v802_v42 = vadd.f32 %v2571_v1, %v801_v41  ;;  %v872_v40 = vpop.f32.mrf.mxu0 }
 0xbb0   :  { %v878_v43 = vadd.f32 %v872_v40, %v2503_v28  ;;  %v2077_v44 = vpop.f32.mrf.mxu1 }
 0xbb1   :  { %2277 = vtanh.f32 %v802_v42  ;;  %v2085_v45 = vpop.f32.mrf.mxu0  ;;  %v1853_v52 = vmul.f32 -1.442695, %v802_v42 }
 0xbb2   :  { %2279 = vtanh.f32 %v878_v43  ;;  %v804_v46 = vpop.f32.mrf.mxu1  ;;  %v1855_v56 = vmul.f32 -1.442695, %v878_v43 }
 0xbb3   :  { %v875_v47 = vpop.f32.mrf.mxu0  ;;  %2281 = vpow2.f32 %v1853_v52 }
 0xbb4   :  { %v2078_v48 = vpop.f32.mrf.mxu1  ;;  %2283 = vpow2.f32 %v1855_v56 }
 0xbb5   :  { %v2086_v49 = vpop.f32.mrf.mxu0 }
 0xbbe   :  { %v2278_v50 = vpop.eup %2277 }
 0xbbf   :  { %v2280_v51 = vpop.eup %2279  ;;  %816 = vrot.lane.b32.xlu0 %v2278_v50, %s2395_s16 }
 0xbc0   :  { %888 = vrot.lane.b32.xlu1 %v2280_v51, %s2395_s16  ;;  %v2282_v58 = vpop.eup %2281 }
 0xbc1   :  { %v2284_v28 = vpop.eup %2283  ;;  %v810_v59 = vadd.f32 1.0, %v2282_v58 }
 0xbc2   :  { %v882_v60 = vadd.f32 1.0, %v2284_v28 }
 0xbc3   :  { %2285 = vrcp.f32 %v810_v59 }
 0xbc4   :  { %2287 = vrcp.f32 %v882_v60 }
 0xbd0   :  { %v2286_v61 = vpop.eup %2285 }
 0xbd1   :  { %v2288_v63 = vpop.eup %2287  ;;  %v814_v22 = vmul.f32 %v2286_v61, %v2656_v17 }
 0xbd2   :  { %v886_v7 = vmul.f32 %v2288_v63, %v2658_v19 }
 0xc31   :  { %v817_v62 = vpop.permute.xlu0 %816 }
 0xc32   :  { %v819_v0 = vmul.f32 %v2286_v61, %v817_v62  ;;  %v889_v3 = vpop.permute.xlu1 %888 }
 0xc33   :  { %v891_v4 = vmul.f32 %v2288_v63, %v889_v3 }
 0xc34   :  { %821 = vrot.lane.b32.xlu0 %v819_v0, %s2396_s17 }
 0xc35   :  { %893 = vrot.lane.b32.xlu1 %v891_v4, %s2396_s17 }
 0xca6   :  { %v822_v5 = vpop.permute.xlu0 %821 }
 0xca7   :  { %v2694_v8 = vadd.f32 %v822_v5, %v814_v22  ;;  %v894_v10 = vpop.permute.xlu1 %893 }
 0xca8   :  { %v2696_v11 = vadd.f32 %v894_v10, %v886_v7 }
 0xca9   :  { %2289 = vtanh.f32 %v2694_v8 }
 0xcaa   :  { %2291 = vtanh.f32 %v2696_v11 }
 0xcb6   :  { %v2290_v12 = vpop.eup %2289 }
 0xcb7   :  { %v2292_v13 = vpop.eup %2291  ;;  %827 = vrot.lane.b32.xlu0 %v2290_v12, %s2395_s16 }
 0xcb8   :  { %899 = vrot.lane.b32.xlu1 %v2292_v13, %s2395_s16 }
 0xd29   :  { %v828_v24 = vpop.permute.xlu0 %827 }
 0xd2a   :  { %v830_v14 = vmul.f32 %v2286_v61, %v828_v24  ;;  %v900_v15 = vpop.permute.xlu1 %899 }
 0xd2b   :  { %v902_v16 = vmul.f32 %v2288_v63, %v900_v15 }
 0xd2c   :  { %908 = vrot.lane.b32.xlu1 %v830_v14, %s2395_s16 }
 0xd2d   :  { %904 = vrot.lane.b32.xlu0 %v902_v16, %s2396_s17  ;;  %v980_v17 = vpack.c.bf16 %v902_v16, %v902_v16 }
 0xd31   :  { %982 = vrot.lane.b32.xlu0 %v980_v17, %s2396_s17 }
 0xd9e   :  { %v909_v18 = vpop.permute.xlu1 %908 }
 0xd9f   :  { %v905_v19 = vpop.permute.xlu0 %904 }
 0xda0   :  { %v911_v20 = vsel %vm217_vm3, %v905_v19, %v909_v18 }
 0xda1   :  { %v912_v21 = vpack.c.bf16 %v911_v20, %v911_v20 }
 0xda3   :  { %v983_v23 = vpop.permute.xlu0 %982  ;;  %2096 = vmatmul.mubr.msk.bf16.vlgmr.msra.gmra.mxu0 %vm316_vm4, %v912_v21 }
 0xda4   :  { %2104 = vmatmul.mubr.msk.bf16.vlgmr.msra.gmra.mxu1 %vm217_vm3, %v983_v23  ;;  %2120 = vmatpush3.bf16.msra.mxu0 %v2439_v6 }
 0xda5   :  { %2108 = vmatpush3.bf16.msra.mxu1 %v2521_v53  ;;  %2121 = vmatprep.subr.bf16.mxu0 %v2392_v2 }
 0xda6   :  { %2109 = vmatprep.subr.bf16.mxu1 %v2392_v2  ;;  %2115 = vmatprep.mubr.msk.bf16.mxu1 %vm2393_vm2, %v2392_v2 }
 0xda7   :  { %2123 = vmatprep.mubr.msk.bf16.mxu0 %vm2393_vm2, %v2392_v2 }
 0xda8   :  { %2122 = vmatpush3.bf16.msra.mxu0 %v2450_v9 }
 0xda9   :  { %2110 = vmatpush3.bf16.msra.mxu1 %v2527_v54  ;;  %2127 = vmatprep.subr.bf16.mxu0 %v2392_v2 }
 0xdaa   :  { %2111 = vmatprep.subr.bf16.mxu1 %v2392_v2 }
 0xdad   :  { %2112 = vmatpush3.bf16.msra.mxu1 %v2534_v55 }
 0xdae   :  { %2113 = vmatprep.subr.bf16.mxu1 %v2392_v2 }
 0xdb1   :  { %2114 = vmatpush3.bf16.msra.mxu1 %v2543_v57 }
 0xdb2   :  { %2139 = vmatprep.subr.bf16.mxu1 %v2392_v2 }
 0xe63   :  { %v950_v25 = vpop.f32.mrf.mxu0 }
 0xe64   :  { %v951_v27 = vadd.f32 %v2571_v1, %v950_v25  ;;  %v1021_v29 = vpop.f32.mrf.mxu1 }
 0xe65   :  { %v1027_v31 = vadd.f32 %v1021_v29, %v2501_v26  ;;  %v2097_v33 = vpop.f32.mrf.mxu0 }
 0xe66   :  { %2293 = vtanh.f32 %v951_v27  ;;  %v2105_v35 = vpop.f32.mrf.mxu1  ;;  %v1857_v43 = vmul.f32 -1.442695, %v951_v27 }
 0xe67   :  { %2295 = vtanh.f32 %v1027_v31  ;;  %v953_v36 = vpop.f32.mrf.mxu0  ;;  %v1859_v44 = vmul.f32 -1.442695, %v1027_v31 }
 0xe68   :  { %v1024_v38 = vpop.f32.mrf.mxu1  ;;  %2297 = vpow2.f32 %v1857_v43 }
 0xe69   :  { %v2098_v39 = vpop.f32.mrf.mxu0  ;;  %2299 = vpow2.f32 %v1859_v44 }
 0xe6a   :  { %v2106_v41 = vpop.f32.mrf.mxu1 }
 0xe73   :  { %v2294_v42 = vpop.eup %2293 }
 0xe74   :  { %v2296_v40 = vpop.eup %2295  ;;  %965 = vrot.lane.b32.xlu1 %v2294_v42, %s2395_s16 }
 0xe75   :  { %1037 = vrot.lane.b32.xlu0 %v2296_v40, %s2395_s16  ;;  %v2298_v45 = vpop.eup %2297 }
 0xe76   :  { %v2300_v26 = vpop.eup %2299  ;;  %v959_v46 = vadd.f32 1.0, %v2298_v45 }
 0xe77   :  { %v1031_v47 = vadd.f32 1.0, %v2300_v26 }
 0xe78   :  { %2301 = vrcp.f32 %v959_v46 }
 0xe79   :  { %2303 = vrcp.f32 %v1031_v47 }
 0xe85   :  { %v2302_v48 = vpop.eup %2301 }
 0xe86   :  { %v2304_v50 = vpop.eup %2303  ;;  %v963_v58 = vmul.f32 %v2302_v48, %v2694_v8 }
 0xe87   :  { %v1035_v59 = vmul.f32 %v2304_v50, %v2696_v11 }
 0xee6   :  { %v966_v49 = vpop.permute.xlu1 %965 }
 0xee7   :  { %v968_v51 = vmul.f32 %v2302_v48, %v966_v49  ;;  %v1038_v52 = vpop.permute.xlu0 %1037 }
 0xee8   :  { %v1040_v56 = vmul.f32 %v2304_v50, %v1038_v52 }
 0xee9   :  { %970 = vrot.lane.b32.xlu1 %v968_v51, %s2396_s17 }
 0xeea   :  { %1042 = vrot.lane.b32.xlu0 %v1040_v56, %s2396_s17 }
 0xf5b   :  { %v971_v28 = vpop.permute.xlu1 %970 }
 0xf5c   :  { %v2732_v60 = vadd.f32 %v971_v28, %v963_v58  ;;  %v1043_v61 = vpop.permute.xlu0 %1042 }
 0xf5d   :  { %v2734_v62 = vadd.f32 %v1043_v61, %v1035_v59 }
 0xf5e   :  { %2305 = vtanh.f32 %v2732_v60 }
 0xf5f   :  { %2307 = vtanh.f32 %v2734_v62 }
 0xf6b   :  { %v2306_v63 = vpop.eup %2305 }
 0xf6c   :  { %v2308_v0 = vpop.eup %2307  ;;  %976 = vrot.lane.b32.xlu1 %v2306_v63, %s2395_s16  ;;  %v2800_v63 = vld [vmem:[%s2949_s1] sm:$0xff]  }
 0xf6d   :  { %1048 = vrot.lane.b32.xlu0 %v2308_v0, %s2395_s16 }
 0xfde   :  { %v977_v3 = vpop.permute.xlu1 %976 }
 0xfdf   :  { %v979_v4 = vmul.f32 %v2302_v48, %v977_v3  ;;  %v1049_v22 = vpop.permute.xlu0 %1048 }
 0xfe0   :  { %v1051_v5 = vmul.f32 %v2304_v50, %v1049_v22 }
 0xfe1   :  { %1057 = vrot.lane.b32.xlu0 %v979_v4, %s2395_s16 }
 0xfe2   :  { %1053 = vrot.lane.b32.xlu1 %v1051_v5, %s2396_s17  ;;  %v1129_v7 = vpack.c.bf16 %v1051_v5, %v1051_v5 }
 0xfe6   :  { %1131 = vrot.lane.b32.xlu1 %v1129_v7, %s2396_s17 }
0x1053   :  { %v1058_v8 = vpop.permute.xlu0 %1057 }
0x1054   :  { %v1054_v10 = vpop.permute.xlu1 %1053 }
0x1055   :  { %v1060_v11 = vsel %vm217_vm3, %v1054_v10, %v1058_v8 }
0x1056   :  { %v1061_v12 = vpack.c.bf16 %v1060_v11, %v1060_v11 }
0x1058   :  { %2116 = vmatmul.mubr.msk.bf16.vlgmr.msra.gmra.mxu1 %vm316_vm4, %v1061_v12  ;;  %v1132_v13 = vpop.permute.xlu1 %1131 }
0x1059   :  { %2124 = vmatmul.mubr.msk.bf16.vlgmr.msra.gmra.mxu0 %vm217_vm3, %v1132_v13  ;;  %2140 = vmatpush3.bf16.msra.mxu1 %v2439_v6 }
0x105a   :  { %2128 = vmatpush3.bf16.msra.mxu0 %v2521_v53  ;;  %2141 = vmatprep.subr.bf16.mxu1 %v2392_v2 }
0x105b   :  { %2129 = vmatprep.subr.bf16.mxu0 %v2392_v2  ;;  %2135 = vmatprep.mubr.msk.bf16.mxu0 %vm2393_vm2, %v2392_v2 }
0x105c   :  { %2143 = vmatprep.mubr.msk.bf16.mxu1 %vm2393_vm2, %v2392_v2 }
0x105d   :  { %2142 = vmatpush3.bf16.msra.mxu1 %v2450_v9 }
0x105e   :  { %2130 = vmatpush3.bf16.msra.mxu0 %v2527_v54  ;;  %2147 = vmatprep.subr.bf16.mxu1 %v2392_v2 }
0x105f   :  { %2131 = vmatprep.subr.bf16.mxu0 %v2392_v2 }
0x1062   :  { %2132 = vmatpush3.bf16.msra.mxu0 %v2534_v55 }
0x1063   :  { %2133 = vmatprep.subr.bf16.mxu0 %v2392_v2 }
0x1066   :  { %2134 = vmatpush3.bf16.msra.mxu0 %v2543_v57 }
0x1067   :  { %2159 = vmatprep.subr.bf16.mxu0 %v2392_v2 }
0x1118   :  { %v1099_v6 = vpop.f32.mrf.mxu1 }
0x1119   :  { %v1100_v24 = vadd.f32 %v2571_v1, %v1099_v6  ;;  %v1170_v14 = vpop.f32.mrf.mxu0 }
0x111a   :  { %v1176_v9 = vadd.f32 %v1170_v14, %v2507_v32  ;;  %v2117_v15 = vpop.f32.mrf.mxu1 }
0x111b   :  { %2309 = vtanh.f32 %v1100_v24  ;;  %v2125_v16 = vpop.f32.mrf.mxu0  ;;  %v1861_v25 = vmul.f32 -1.442695, %v1100_v24 }
0x111c   :  { %2311 = vtanh.f32 %v1176_v9  ;;  %v1102_v17 = vpop.f32.mrf.mxu1  ;;  %v1863_v27 = vmul.f32 -1.442695, %v1176_v9 }
0x111d   :  { %v1173_v18 = vpop.f32.mrf.mxu0  ;;  %2313 = vpow2.f32 %v1861_v25 }
0x111e   :  { %v2118_v19 = vpop.f32.mrf.mxu1  ;;  %2315 = vpow2.f32 %v1863_v27 }
0x111f   :  { %v2126_v20 = vpop.f32.mrf.mxu0 }
0x1128   :  { %v2310_v21 = vpop.eup %2309 }
0x1129   :  { %v2312_v23 = vpop.eup %2311  ;;  %1114 = vrot.lane.b32.xlu0 %v2310_v21, %s2395_s16 }
0x112a   :  { %1186 = vrot.lane.b32.xlu1 %v2312_v23, %s2395_s16  ;;  %v2314_v29 = vpop.eup %2313 }
0x112b   :  { %v2316_v32 = vpop.eup %2315  ;;  %v1108_v31 = vadd.f32 1.0, %v2314_v29 }
0x112c   :  { %v1180_v33 = vadd.f32 1.0, %v2316_v32 }
0x112d   :  { %2317 = vrcp.f32 %v1108_v31 }
0x112e   :  { %2319 = vrcp.f32 %v1180_v33 }
0x113a   :  { %v2318_v35 = vpop.eup %2317 }
0x113b   :  { %v2320_v38 = vpop.eup %2319  ;;  %v1112_v40 = vmul.f32 %v2318_v35, %v2732_v60 }
0x113c   :  { %v1184_v44 = vmul.f32 %v2320_v38, %v2734_v62  ;;  %v2787_v62 = vld [vmem:[%s2949_s1 + $0x8] sm:$0xff]  }
0x119b   :  { %v1115_v36 = vpop.permute.xlu0 %1114 }
0x119c   :  { %v1117_v39 = vmul.f32 %v2318_v35, %v1115_v36  ;;  %v1187_v41 = vpop.permute.xlu1 %1186 }
0x119d   :  { %v1189_v42 = vmul.f32 %v2320_v38, %v1187_v41 }
0x119e   :  { %1119 = vrot.lane.b32.xlu0 %v1117_v39, %s2396_s17 }
0x119f   :  { %1191 = vrot.lane.b32.xlu1 %v1189_v42, %s2396_s17 }
0x1210   :  { %v1120_v43 = vpop.permute.xlu0 %1119 }
0x1211   :  { %v2770_v45 = vadd.f32 %v1120_v43, %v1112_v40  ;;  %v1192_v26 = vpop.permute.xlu1 %1191  ;;  %v2836_v43 = vld [vmem:[%s2949_s1 + $0x28] sm:$0xff]  }
0x1212   :  { %v2772_v46 = vadd.f32 %v1192_v26, %v1184_v44  ;;  %v2849_v44 = vld [vmem:[%s2949_s1 + $0x20] sm:$0xff]   ;;  %v2864_v26 = vld [vmem:[%s2949_s1 + $0x10] sm:$0xff]  }
0x1213   :  { %2321 = vtanh.f32 %v2770_v45 }
0x1214   :  { %2323 = vtanh.f32 %v2772_v46 }
0x1220   :  { %v2322_v47 = vpop.eup %2321 }
0x1221   :  { %v2324_v48 = vpop.eup %2323  ;;  %1125 = vrot.lane.b32.xlu0 %v2322_v47, %s2395_s16  ;;  %v2870_v47 = vld [vmem:[%s2947_s2 + $0x19] ss:$0 sm:$0xff] }
0x1222   :  { %1197 = vrot.lane.b32.xlu1 %v2324_v48, %s2395_s16 }
0x1293   :  { %v1126_v49 = vpop.permute.xlu0 %1125 }
0x1294   :  { %v1128_v50 = vmul.f32 %v2318_v35, %v1126_v49  ;;  %v1198_v51 = vpop.permute.xlu1 %1197 }
0x1295   :  { %v1200_v52 = vmul.f32 %v2320_v38, %v1198_v51 }
0x1296   :  { %1206 = vrot.lane.b32.xlu1 %v1128_v50, %s2395_s16 }
0x1297   :  { %1202 = vrot.lane.b32.xlu0 %v1200_v52, %s2396_s17  ;;  %v1278_v56 = vpack.c.bf16 %v1200_v52, %v1200_v52 }
0x129b   :  { %1280 = vrot.lane.b32.xlu0 %v1278_v56, %s2396_s17 }
0x1308   :  { %v1207_v58 = vpop.permute.xlu1 %1206 }
0x1309   :  { %v1203_v28 = vpop.permute.xlu0 %1202 }
0x130a   :  { %v1209_v59 = vsel %vm217_vm3, %v1203_v28, %v1207_v58 }
0x130b   :  { %v1210_v60 = vpack.c.bf16 %v1209_v59, %v1209_v59 }
0x130d   :  { %v1281_v61 = vpop.permute.xlu0 %1280  ;;  %2136 = vmatmul.mubr.msk.bf16.vlgmr.msra.gmra.mxu0 %vm316_vm4, %v1210_v60 }
0x130e   :  { %2144 = vmatmul.mubr.msk.bf16.vlgmr.msra.gmra.mxu1 %vm217_vm3, %v1281_v61  ;;  %2160 = vmatpush3.bf16.msra.mxu0 %v2787_v62 }
0x130f   :  { %2148 = vmatpush3.bf16.msra.mxu1 %v2521_v53  ;;  %2161 = vmatprep.subr.bf16.mxu0 %v2392_v2 }
0x1310   :  { %2149 = vmatprep.subr.bf16.mxu1 %v2392_v2  ;;  %2155 = vmatprep.mubr.msk.bf16.mxu1 %vm2393_vm2, %v2392_v2 }
0x1311   :  { %2163 = vmatprep.mubr.msk.bf16.mxu0 %vm2393_vm2, %v2392_v2 }
0x1312   :  { %2162 = vmatpush3.bf16.msra.mxu0 %v2800_v63 }
0x1313   :  { %2150 = vmatpush3.bf16.msra.mxu1 %v2527_v54  ;;  %2167 = vmatprep.subr.bf16.mxu0 %v2392_v2 }
0x1314   :  { %2151 = vmatprep.subr.bf16.mxu1 %v2392_v2 }
0x1317   :  { %2152 = vmatpush3.bf16.msra.mxu1 %v2534_v55 }
0x1318   :  { %2153 = vmatprep.subr.bf16.mxu1 %v2392_v2 }
0x131b   :  { %2154 = vmatpush3.bf16.msra.mxu1 %v2543_v57 }
0x131c   :  { %2179 = vmatprep.subr.bf16.mxu1 %v2392_v2 }
0x13cd   :  { %v1248_v53 = vpop.f32.mrf.mxu0 }
0x13ce   :  { %v1249_v0 = vadd.f32 %v2571_v1, %v1248_v53  ;;  %v1319_v3 = vpop.f32.mrf.mxu1 }
0x13cf   :  { %v1325_v4 = vadd.f32 %v1319_v3, %v2505_v30  ;;  %v2137_v22 = vpop.f32.mrf.mxu0 }
0x13d0   :  { %2325 = vtanh.f32 %v1249_v0  ;;  %v2145_v54 = vpop.f32.mrf.mxu1  ;;  %v1865_v57 = vmul.f32 -1.442695, %v1249_v0 }
0x13d1   :  { %2327 = vtanh.f32 %v1325_v4  ;;  %v1251_v5 = vpop.f32.mrf.mxu0  ;;  %v1867_v12 = vmul.f32 -1.442695, %v1325_v4 }
0x13d2   :  { %v1322_v7 = vpop.f32.mrf.mxu1  ;;  %2329 = vpow2.f32 %v1865_v57 }
0x13d3   :  { %v2138_v8 = vpop.f32.mrf.mxu0  ;;  %2331 = vpow2.f32 %v1867_v12 }
0x13d4   :  { %v2146_v55 = vpop.f32.mrf.mxu1 }
0x13dd   :  { %v2326_v10 = vpop.eup %2325 }
0x13de   :  { %v2328_v11 = vpop.eup %2327  ;;  %1263 = vrot.lane.b32.xlu1 %v2326_v10, %s2395_s16 }
0x13df   :  { %1335 = vrot.lane.b32.xlu0 %v2328_v11, %s2395_s16  ;;  %v2330_v1 = vpop.eup %2329 }
0x13e0   :  { %v2332_v30 = vpop.eup %2331  ;;  %v1257_v13 = vadd.f32 1.0, %v2330_v1 }
0x13e1   :  { %v1329_v6 = vadd.f32 1.0, %v2332_v30 }
0x13e2   :  { %2333 = vrcp.f32 %v1257_v13 }
0x13e3   :  { %2335 = vrcp.f32 %v1329_v6 }
0x13ef   :  { %v2334_v24 = vpop.eup %2333 }
0x13f0   :  { %v2336_v9 = vpop.eup %2335  ;;  %v1261_v18 = vmul.f32 %v2334_v24, %v2770_v45  ;;  %v2857_v45 = vld [vmem:[%s2949_s1 + $0x18] sm:$0xff]  }
0x13f1   :  { %v1333_v20 = vmul.f32 %v2336_v9, %v2772_v46 }
0x1450   :  { %v1264_v14 = vpop.permute.xlu1 %1263 }
0x1451   :  { %v1266_v15 = vmul.f32 %v2334_v24, %v1264_v14  ;;  %v1336_v16 = vpop.permute.xlu0 %1335 }
0x1452   :  { %v1338_v17 = vmul.f32 %v2336_v9, %v1336_v16 }
0x1453   :  { %1268 = vrot.lane.b32.xlu1 %v1266_v15, %s2396_s17 }
0x1454   :  { %1340 = vrot.lane.b32.xlu0 %v1338_v17, %s2396_s17 }
0x14c5   :  { %v1269_v19 = vpop.permute.xlu1 %1268 }
0x14c6   :  { %v2818_v21 = vadd.f32 %v1269_v19, %v1261_v18  ;;  %v1341_v23 = vpop.permute.xlu0 %1340 }
0x14c7   :  { %v2820_v25 = vadd.f32 %v1341_v23, %v1333_v20 }
0x14c8   :  { %2337 = vtanh.f32 %v2818_v21 }
0x14c9   :  { %2339 = vtanh.f32 %v2820_v25 }
0x14d5   :  { %v2338_v27 = vpop.eup %2337 }
0x14d6   :  { %v2340_v29 = vpop.eup %2339  ;;  %1274 = vrot.lane.b32.xlu1 %v2338_v27, %s2395_s16 }
0x14d7   :  { %1346 = vrot.lane.b32.xlu0 %v2340_v29, %s2395_s16 }
0x1548   :  { %v1275_v32 = vpop.permute.xlu1 %1274 }
0x1549   :  { %v1277_v31 = vmul.f32 %v2334_v24, %v1275_v32  ;;  %v1347_v33 = vpop.permute.xlu0 %1346 }
0x154a   :  { %v1349_v35 = vmul.f32 %v2336_v9, %v1347_v33 }
0x154b   :  { %1355 = vrot.lane.b32.xlu0 %v1277_v31, %s2395_s16 }
0x154c   :  { %1351 = vrot.lane.b32.xlu1 %v1349_v35, %s2396_s17  ;;  %v1427_v36 = vpack.c.bf16 %v1349_v35, %v1349_v35 }
0x1550   :  { %1429 = vrot.lane.b32.xlu1 %v1427_v36, %s2396_s17 }
0x15bd   :  { %v1356_v38 = vpop.permute.xlu0 %1355 }
0x15be   :  { %v1352_v39 = vpop.permute.xlu1 %1351 }
0x15bf   :  { %v1358_v41 = vsel %vm217_vm3, %v1352_v39, %v1356_v38 }
0x15c0   :  { %v1359_v42 = vpack.c.bf16 %v1358_v41, %v1358_v41 }
0x15c2   :  { %2156 = vmatmul.mubr.msk.bf16.vlgmr.msra.gmra.mxu1 %vm316_vm4, %v1359_v42  ;;  %v1430_v40 = vpop.permute.xlu1 %1429 }
0x15c3   :  { %2164 = vmatmul.mubr.msk.bf16.vlgmr.msra.gmra.mxu0 %vm217_vm3, %v1430_v40  ;;  %2180 = vmatpush3.bf16.msra.mxu1 %v2787_v62 }
0x15c4   :  { %2168 = vmatpush3.bf16.msra.mxu0 %v2836_v43  ;;  %2181 = vmatprep.subr.bf16.mxu1 %v2392_v2 }
0x15c5   :  { %2169 = vmatprep.subr.bf16.mxu0 %v2392_v2  ;;  %2175 = vmatprep.mubr.msk.bf16.mxu0 %vm2393_vm2, %v2392_v2 }
0x15c6   :  { %2183 = vmatprep.mubr.msk.bf16.mxu1 %vm2393_vm2, %v2392_v2 }
0x15c7   :  { %2182 = vmatpush3.bf16.msra.mxu1 %v2800_v63 }
0x15c8   :  { %2170 = vmatpush3.bf16.msra.mxu0 %v2849_v44  ;;  %2187 = vmatprep.subr.bf16.mxu1 %v2392_v2 }
0x15c9   :  { %2171 = vmatprep.subr.bf16.mxu0 %v2392_v2 }
0x15cc   :  { %2172 = vmatpush3.bf16.msra.mxu0 %v2857_v45 }
0x15cd   :  { %2173 = vmatprep.subr.bf16.mxu0 %v2392_v2 }
0x15d0   :  { %2174 = vmatpush3.bf16.msra.mxu0 %v2864_v26 }
0x1682   :  { %v1397_v46 = vpop.f32.mrf.mxu1 }
0x1683   :  { %v1398_v48 = vadd.f32 %v2870_v47, %v1397_v46  ;;  %v1468_v49 = vpop.f32.mrf.mxu0 }
0x1684   :  { %v1474_v50 = vadd.f32 %v1468_v49, %v2511_v37  ;;  %v2157_v51 = vpop.f32.mrf.mxu1 }
0x1685   :  { %2341 = vtanh.f32 %v1398_v48  ;;  %v2165_v52 = vpop.f32.mrf.mxu0  ;;  %v1869_v62 = vmul.f32 -1.442695, %v1398_v48 }
0x1686   :  { %2343 = vtanh.f32 %v1474_v50  ;;  %v1400_v56 = vpop.f32.mrf.mxu1  ;;  %v1871_v63 = vmul.f32 -1.442695, %v1474_v50 }
0x1687   :  { %v1471_v58 = vpop.f32.mrf.mxu0  ;;  %2345 = vpow2.f32 %v1869_v62 }
0x1688   :  { %v2158_v28 = vpop.f32.mrf.mxu1  ;;  %2347 = vpow2.f32 %v1871_v63 }
0x1689   :  { %v2166_v59 = vpop.f32.mrf.mxu0 }
0x1692   :  { %v2342_v60 = vpop.eup %2341 }
0x1693   :  { %v2344_v61 = vpop.eup %2343  ;;  %1412 = vrot.lane.b32.xlu0 %v2342_v60, %s2395_s16 }
0x1694   :  { %1484 = vrot.lane.b32.xlu1 %v2344_v61, %s2395_s16  ;;  %v2346_v53 = vpop.eup %2345 }
0x1695   :  { %v2348_v37 = vpop.eup %2347  ;;  %v1406_v0 = vadd.f32 1.0, %v2346_v53 }
0x1696   :  { %v1478_v3 = vadd.f32 1.0, %v2348_v37 }
0x1697   :  { %2349 = vrcp.f32 %v1406_v0 }
0x1698   :  { %2351 = vrcp.f32 %v1478_v3 }
0x16a4   :  { %v2350_v4 = vpop.eup %2349 }
0x16a5   :  { %v2352_v54 = vpop.eup %2351  ;;  %v1410_v55 = vmul.f32 %v2350_v4, %v2818_v21 }
0x16a6   :  { %v1482_v11 = vmul.f32 %v2352_v54, %v2820_v25 }
0x1705   :  { %v1413_v22 = vpop.permute.xlu0 %1412 }
0x1706   :  { %v1415_v5 = vmul.f32 %v2350_v4, %v1413_v22  ;;  %v1485_v7 = vpop.permute.xlu1 %1484 }
0x1707   :  { %v1487_v8 = vmul.f32 %v2352_v54, %v1485_v7 }
0x1708   :  { %1417 = vrot.lane.b32.xlu0 %v1415_v5, %s2396_s17 }
0x1709   :  { %1489 = vrot.lane.b32.xlu1 %v1487_v8, %s2396_s17 }
0x177a   :  { %v1418_v10 = vpop.permute.xlu0 %1417 }
0x177b   :  { %v2880_v57 = vadd.f32 %v1418_v10, %v1410_v55  ;;  %v1490_v12 = vpop.permute.xlu1 %1489 }
0x177c   :  { %v2882_v1 = vadd.f32 %v1490_v12, %v1482_v11 }
0x177d   :  { %2353 = vtanh.f32 %v2880_v57 }
0x177e   :  { %2355 = vtanh.f32 %v2882_v1 }
0x178a   :  { %v2354_v30 = vpop.eup %2353 }
0x178b   :  { %v2356_v13 = vpop.eup %2355  ;;  %1423 = vrot.lane.b32.xlu0 %v2354_v30, %s2395_s16 }
0x178c   :  { %1495 = vrot.lane.b32.xlu1 %v2356_v13, %s2395_s16 }
0x17fd   :  { %v1424_v6 = vpop.permute.xlu0 %1423 }
0x17fe   :  { %v1426_v24 = vmul.f32 %v2350_v4, %v1424_v6  ;;  %v1496_v14 = vpop.permute.xlu1 %1495 }
0x17ff   :  { %v1498_v9 = vmul.f32 %v2352_v54, %v1496_v14  ;;  %v24_v14 = vld [vmem:[%s2947_s2 + $0x38] sm:$0xff] }
0x1800   :  { %1504 = vrot.lane.b32.xlu1 %v1426_v24, %s2395_s16 }
0x1801   :  { %1500 = vrot.lane.b32.xlu0 %v1498_v9, %s2396_s17  ;;  %v1576_v15 = vpack.c.bf16 %v1498_v9, %v1498_v9  ;;  %v23_v9 = vld [vmem:[%s2947_s2 + $0x30] sm:$0xff] }
0x1805   :  { %1578 = vrot.lane.b32.xlu0 %v1576_v15, %s2396_s17  ;;  %v22_v15 = vld [vmem:[%s2947_s2 + $0x28] sm:$0xff] }
0x1872   :  { %v1505_v16 = vpop.permute.xlu1 %1504 }
0x1873   :  { %v1501_v17 = vpop.permute.xlu0 %1500 }
0x1874   :  { %v1507_v18 = vsel %vm217_vm3, %v1501_v17, %v1505_v16  ;;  %v21_v16 = vld [vmem:[%s2947_s2 + $0x20] sm:$0xff] }
0x1875   :  { %v1508_v19 = vpack.c.bf16 %v1507_v18, %v1507_v18 }
0x1877   :  { %v1579_v20 = vpop.permute.xlu0 %1578  ;;  %2176 = vmatmul.mubr.msk.bf16.vlgmr.msra.gmra.mxu0 %vm316_vm4, %v1508_v19 }
0x1878   :  { %2184 = vmatmul.mubr.msk.bf16.vlgmr.msra.gmra.mxu1 %vm217_vm3, %v1579_v20 }
0x1879   :  { %2188 = vmatpush3.bf16.msra.mxu1 %v2836_v43  ;;  %2195 = vmatprep.mubr.msk.bf16.mxu1 %vm2393_vm2, %v2392_v2 }
0x187a   :  { %2189 = vmatprep.subr.bf16.mxu1 %v2392_v2 }
0x187d   :  { %2190 = vmatpush3.bf16.msra.mxu1 %v2849_v44 }
0x187e   :  { %2191 = vmatprep.subr.bf16.mxu1 %v2392_v2 }
0x1881   :  { %2192 = vmatpush3.bf16.msra.mxu1 %v2857_v45 }
0x1882   :  { %2193 = vmatprep.subr.bf16.mxu1 %v2392_v2 }
0x1885   :  { %2194 = vmatpush3.bf16.msra.mxu1 %v2864_v26 }
0x1886   :  { %2199 = vmatprep.subr.mxu1 %v2392_v2 }
0x1937   :  { %v1546_v21 = vpop.f32.mrf.mxu0 }
0x1938   :  { %v1547_v23 = vadd.f32 %v2870_v47, %v1546_v21  ;;  %v1617_v25 = vpop.f32.mrf.mxu1  ;;  %v1878_v21 = vld [vmem:[%s2947_s2 + $0x1a] ss:$0 sm:$0xff] }
0x1939   :  { %v1623_v27 = vadd.f32 %v1617_v25, %v2509_v34  ;;  %v2177_v29 = vpop.f32.mrf.mxu0 }
0x193a   :  { %2357 = vtanh.f32 %v1547_v23  ;;  %v2185_v32 = vpop.f32.mrf.mxu1  ;;  %v1873_v41 = vmul.f32 -1.442695, %v1547_v23 }
0x193b   :  { %2359 = vtanh.f32 %v1623_v27  ;;  %v1549_v31 = vpop.f32.mrf.mxu0  ;;  %v1875_v42 = vmul.f32 -1.442695, %v1623_v27 }
0x193c   :  { %v1620_v33 = vpop.f32.mrf.mxu1  ;;  %2361 = vpow2.f32 %v1873_v41 }
0x193d   :  { %v2178_v35 = vpop.f32.mrf.mxu0  ;;  %2363 = vpow2.f32 %v1875_v42 }
0x193e   :  { %v2186_v36 = vpop.f32.mrf.mxu1 }
0x1947   :  { %v2358_v38 = vpop.eup %2357 }
0x1948   :  { %v2360_v39 = vpop.eup %2359  ;;  %1561 = vrot.lane.b32.xlu1 %v2358_v38, %s2395_s16 }
0x1949   :  { %1633 = vrot.lane.b32.xlu0 %v2360_v39, %s2395_s16  ;;  %v2362_v40 = vpop.eup %2361 }
0x194a   :  { %v2364_v34 = vpop.eup %2363  ;;  %v1555_v43 = vadd.f32 1.0, %v2362_v40 }
0x194b   :  { %v1627_v44 = vadd.f32 1.0, %v2364_v34 }
0x194c   :  { %2365 = vrcp.f32 %v1555_v43 }
0x194d   :  { %2367 = vrcp.f32 %v1627_v44 }
0x1959   :  { %v2366_v45 = vpop.eup %2365 }
0x195a   :  { %v2368_v46 = vpop.eup %2367  ;;  %v1559_v51 = vmul.f32 %v2366_v45, %v2880_v57 }
0x195b   :  { %v1631_v56 = vmul.f32 %v2368_v46, %v2882_v1 }
0x19ba   :  { %v1562_v26 = vpop.permute.xlu1 %1561 }
0x19bb   :  { %v1564_v48 = vmul.f32 %v2366_v45, %v1562_v26  ;;  %v1634_v49 = vpop.permute.xlu0 %1633 }
0x19bc   :  { %v1636_v50 = vmul.f32 %v2368_v46, %v1634_v49 }
0x19bd   :  { %1566 = vrot.lane.b32.xlu1 %v1564_v48, %s2396_s17 }
0x19be   :  { %1638 = vrot.lane.b32.xlu0 %v1636_v50, %s2396_s17 }
0x1a2f   :  { %v1567_v52 = vpop.permute.xlu1 %1566 }
0x1a30   :  { %v1569_v58 = vadd.f32 %v1567_v52, %v1559_v51  ;;  %v1639_v28 = vpop.permute.xlu0 %1638 }
0x1a31   :  { %v1641_v59 = vadd.f32 %v1639_v28, %v1631_v56 }
0x1a32   :  { %2369 = vtanh.f32 %v1569_v58 }
0x1a33   :  { %2371 = vtanh.f32 %v1641_v59 }
0x1a3f   :  { %v2370_v60 = vpop.eup %2369 }
0x1a40   :  { %v2372_v61 = vpop.eup %2371  ;;  %1572 = vrot.lane.b32.xlu1 %v2370_v60, %s2395_s16 }
0x1a41   :  { %1644 = vrot.lane.b32.xlu0 %v2372_v61, %s2395_s16 }
0x1ab2   :  { %v1573_v62 = vpop.permute.xlu1 %1572 }
0x1ab3   :  { %v1575_v63 = vmul.f32 %v2366_v45, %v1573_v62  ;;  %v1645_v53 = vpop.permute.xlu0 %1644 }
0x1ab4   :  { %v1647_v37 = vmul.f32 %v2368_v46, %v1645_v53 }
0x1ab5   :  { %1653 = vrot.lane.b32.xlu0 %v1575_v63, %s2395_s16 }
0x1ab6   :  { %1649 = vrot.lane.b32.xlu1 %v1647_v37, %s2396_s17 }
0x1b27   :  { %v1654_v0 = vpop.permute.xlu0 %1653 }
0x1b28   :  { %v1650_v3 = vpop.permute.xlu1 %1649 }
0x1b29   :  { %v1656_v4 = vsel %vm217_vm3, %v1650_v3, %v1654_v0 }
0x1b2a   :  { %v1657_v22 = vpack.c.bf16 %v1656_v4, %v1656_v4 }
0x1b2c   :  { %2196 = vmatmul.mubr.msk.bf16.vlgmr.msra.gmra.mxu1 %vm316_vm4, %v1657_v22 }
0x1b2d   :  { %2207 = vmatprep.mubr.msk.f32.mxu1 %vm2393_vm2, %v2392_v2  ;;  %2200 = vmatpush3.msra.mxu1 %v24_v14 }
0x1b2e   :  { %2201 = vmatprep.subr.mxu1 %v2392_v2 }
0x1b2f   :  { %2202 = vmatpush3.msra.mxu1 %v23_v9 }
0x1b30   :  { %2203 = vmatprep.subr.mxu1 %v2392_v2 }
0x1b31   :  { %2204 = vmatpush3.msra.mxu1 %v22_v15 }
0x1b32   :  { %2205 = vmatprep.subr.mxu1 %v2392_v2 }
0x1b33   :  { %2206 = vmatpush3.msra.mxu1 %v21_v16 }
0x1bec   :  { %v1695_v54 = vpop.f32.mrf.mxu1 }
0x1bed   :  { %v1696_v5 = vadd.f32 %v2870_v47, %v1695_v54 }
0x1bee   :  { %v2197_v7 = vpop.f32.mrf.mxu1 }
0x1bef   :  { %2373 = vtanh.f32 %v1696_v5  ;;  %v1877_v11 = vmul.f32 -1.442695, %v1696_v5 }
0x1bf0   :  { %v1698_v8 = vpop.f32.mrf.mxu1 }
0x1bf1   :  { %2375 = vpow2.f32 %v1877_v11 }
0x1bf2   :  { %v2198_v55 = vpop.f32.mrf.mxu1 }
0x1bfc   :  { %v2374_v10 = vpop.eup %2373 }
0x1bfd   :  { %1710 = vrot.lane.b32.xlu1 %v2374_v10, %s2395_s16 }
0x1bfe   :  { %v2376_v57 = vpop.eup %2375 }
0x1bff   :  { %v1704_v12 = vadd.f32 1.0, %v2376_v57 }
0x1c01   :  { %2377 = vrcp.f32 %v1704_v12 }
0x1c0e   :  { %v2378_v1 = vpop.eup %2377 }
0x1c0f   :  { %v1708_v6 = vmul.f32 %v2378_v1, %v1569_v58 }
0x1c6f   :  { %v1711_v30 = vpop.permute.xlu1 %1710 }
0x1c70   :  { %v1713_v13 = vmul.f32 %v2378_v1, %v1711_v30 }
0x1c72   :  { %1715 = vrot.lane.b32.xlu0 %v1713_v13, %s2396_s17 }
0x1ce4   :  { %v1716_v24 = vpop.permute.xlu0 %1715 }
0x1ce5   :  { %v1718_v47 = vadd.f32 %v1716_v24, %v1708_v6 }
0x1ce7   :  { %2379 = vtanh.f32 %v1718_v47 }
0x1cf4   :  { %v2380_v17 = vpop.eup %2379 }
0x1cf5   :  { %1721 = vrot.lane.b32.xlu1 %v2380_v17, %s2395_s16 }
0x1d67   :  { %v1722_v18 = vpop.permute.xlu1 %1721 }
0x1d68   :  { %v1724_v19 = vmul.f32 %v2378_v1, %v1722_v18 }
0x1d6a   :  { %1730 = vrot.lane.b32.xlu0 %v1724_v19, %s2396_s17 }
0x1ddc   :  { %v1731_v20 = vpop.permute.xlu0 %1730 }
0x1ddd   :  { %2208 = vmatmul.mubr.msk.f32.vlgmr.msra.gmra.mxu1 %vm217_vm3, %v1731_v20 }
0x1e9d   :  { %v1800_v23 = vpop.f32.mrf.mxu1 }
0x1e9e   :  { %v1801_v25 = vadd.f32 %v1878_v21, %v1800_v23 }
0x1e9f   :  { %v2209_v27 = vpop.f32.mrf.mxu1 }
0x1ea0   :  { %1804 = vmax.xlane.f32.xlu1 %v1801_v25 }
0x1f29   :  { %v1805_v2 = vpop.xlane.xlu1 %1804 }
0x1f2a   :  { %v1806_v29 = vsub.f32 %v1801_v25, %v1805_v2 }
0x1f2c   :  { %v1807_v32 = vmul.f32 1.442695, %v1806_v29 }
0x1f2e   :  { %2381 = vpow2.f32 %v1807_v32 }
0x1f3b   :  { %v2382_v31 = vpop.eup %2381 }
0x1f3c   :  { %1809 = vadd.xlane.f32.xlu0 %v2382_v31 }
0x1fc5   :  { %v1810_v33 = vpop.xlane.xlu0 %1809 }
0x1fc6   :  { %2383 = vlog2.f32 %v1810_v33 }
0x1fd3   :  { %v2384_v35 = vpop.eup %2383 }
0x1fd4   :  { %v1812_v36 = vmul.f32 0.6931472, %v2384_v35 }
0x1fd6   :  { %v1813_v38 = vadd.f32 %v1812_v36, %v1805_v2 }
0x1fd8   :  { %v1814_v39 = vsub.f32 %v1801_v25, %v1813_v38 }
0x1fda   :  { %1815 = vst [vmem:[%s2950_s3] sm:$0xff] %v1814_v39 }

</bundles_post_ra>
